<compile_context>
chip_gen: v6e
topology: v6e:2x2x1
jax: 0.10.0
libtpu: 0.0.40
codegen_flags: <defaults>
</compile_context>

<pallas_src>
import numpy as np

import jax
import jax.numpy as jnp
from jax.experimental import pallas as pl
from jax.experimental.pallas import tpu as pltpu

SELU_ALPHA = 1.6732632423543772
SELU_SCALE = 1.0507009873554805
BN_EPS = 1e-5

_VMEM = pl.BlockSpec(memory_space=pltpu.MemorySpace.VMEM)


def _selu(x):
    return SELU_SCALE * jnp.where(x > 0, x, SELU_ALPHA * (jnp.exp(x) - 1.0))


def _bn_selu(y, proj, gamma, beta, count):
    """Training-mode BatchNorm (biased var) + SELU on a (rows, x*C) layout.

    `proj` is 0/1 with proj[l, l'] = (channel(l) == channel(l')); one
    (1,L)x(L,L) matmul both reduces over the x lane-blocks and broadcasts the
    per-channel statistic back to every lane.  Single pass: var = E[x^2]-mean^2.
    """
    inv_n = 1.0 / count
    s = jnp.sum(y, axis=0, keepdims=True)
    ss = jnp.sum(y * y, axis=0, keepdims=True)
    mean = jnp.dot(s, proj, preferred_element_type=jnp.float32) * inv_n
    ex2 = jnp.dot(ss, proj, preferred_element_type=jnp.float32) * inv_n
    var = ex2 - mean * mean
    scale = gamma * jax.lax.rsqrt(var + BN_EPS)
    shift = beta - mean * scale
    return _selu(y * scale + shift)


# ----------------------- the single fused Pallas kernel -----------------------

def _encoder_fused_kernel(xs_ref, z_ref, w1r_ref, w2r_ref, w3r_ref,
                          wl1_ref, wl2_ref, mm_ref, vecs_ref, o_ref):
    f32 = jnp.float32
    B = z_ref.shape[0]

    # packed per-channel vectors (biases / BN affine), stored f32
    bias1  = vecs_ref[0:1, 0:112]
    gamma1 = vecs_ref[1:2, 0:112]
    beta1  = vecs_ref[2:3, 0:112]
    bias2  = vecs_ref[3:4, 0:112]
    gamma2 = vecs_ref[4:5, 0:112]
    beta2  = vecs_ref[5:6, 0:112]
    bias3  = vecs_ref[6:7, 0:96]
    bl1    = vecs_ref[7:8, 0:256]
    bl2    = vecs_ref[8:9, 0:16]

    # bf16-stored matrices, upcast once (hoisted out of the batch loops)
    w2  = [w2r_ref[k].astype(f32) for k in range(3)]     # 3 x (112, 112)
    w3  = [w3r_ref[k].astype(f32) for k in range(3)]     # 3 x (112, 96)
    wl1 = [wl1_ref[k].astype(f32) for k in range(3)]     # 3 x (96, 256)
    wl2 = wl2_ref[...].astype(f32)                       # (256, 16)
    m1  = mm_ref[0].astype(f32)                          # (112, 112) 0/1
    m2  = mm_ref[1].astype(f32)

    # --- conv1 (1->8, k3 s2 p1): three lane-dense row-strip matmuls ---------
    # xs_ref[kh] rows are (b, oy1) with oy1 phase-ordered [1,3,..,13,0,2,..,12];
    # lanes are the 30 padded input columns; output lanes are (ox1, c) = 112.
    y1 = jnp.dot(xs_ref[0], w1r_ref[0].astype(f32), preferred_element_type=f32)
    for kh in (1, 2):
        y1 = y1 + jnp.dot(xs_ref[kh], w1r_ref[kh].astype(f32),
                          preferred_element_type=f32)
    y1 = y1 + bias1                                       # (B*14, 112)
    a1 = _bn_selu(y1, m1, gamma1, beta1, float(B * 14 * 14))

    # --- conv2 (8->16, k3 s2 p1) ---------------------------------------------
    # Per image, a1 rows are [odd oy1 rows 0..6 | even oy1 rows 0..6]; each kh
    # tap is therefore a CONTIGUOUS 7-row slice (kh=0 gets one leading zero row
    # for the top padding).  kw taps / stride / channels live in w2[kh].
    zrow = jnp.zeros((1, 112), f32)
    y2_blocks = []
    for b in range(B):
        blk = a1[b * 14:(b + 1) * 14, :]
        left0 = jnp.concatenate([zrow, blk[0:6, :]], axis=0)   # iy1 = 2*oy2-1
        left1 = blk[7:14, :]                                    # iy1 = 2*oy2
        left2 = blk[0:7, :]                                     # iy1 = 2*oy2+1
        yb = jnp.dot(left0, w2[0], preferred_element_type=f32)
        yb = yb + jnp.dot(left1, w2[1], preferred_element_type=f32)
        yb = yb + jnp.dot(left2, w2[2], preferred_element_type=f32)
        y2_blocks.append(yb)                                    # (7, 112)
    y2 = jnp.concatenate(y2_blocks, axis=0) + bias2             # (B*7, 112)
    a2 = _bn_selu(y2, m2, gamma2, beta2, float(B * 7 * 7))

    # --- conv3 (16->32, k3 s2 p0) + SELU + NCHW-flatten + merged mu|sigma ----
    h_rows = []
    for b in range(B):
        blk = a2[b * 7:(b + 1) * 7, :]                          # rows = iy2 0..6
        yb = None
        for kh in range(3):
            left = jnp.concatenate(
                [blk[kh:kh + 1, :], blk[kh + 2:kh + 3, :], blk[kh + 4:kh + 5, :]],
                axis=0)                                         # iy2 = 2*oy3+kh
            part = jnp.dot(left, w3[kh], preferred_element_type=f32)   # (3, 96)
            yb = part if yb is None else yb + part
        a3b = _selu(yb + bias3)                                 # (3, 96)
        # merged first linear heads; the NCHW flatten permutation is folded
        # into the rows of wl1[oy3] at transform time.
        hb = jnp.dot(a3b[0:1, :], wl1[0], preferred_element_type=f32)
        hb = hb + jnp.dot(a3b[1:2, :], wl1[1], preferred_element_type=f32)
        hb = hb + jnp.dot(a3b[2:3, :], wl1[2], preferred_element_type=f32)
        h_rows.append(hb)                                       # (1, 256)

    h = _selu(jnp.concatenate(h_rows, axis=0) + bl1)            # (B, 256)
    out_lin = jnp.dot(h, wl2, preferred_element_type=f32) + bl2  # (B, 16)
    mu = out_lin[:, 0:8]
    sigma = out_lin[:, 8:16]

    # --- reparam: mu + z * exp(sigma / 2) ------------------------------------
    o_ref[...] = mu + z_ref[...] * jnp.exp(sigma * 0.5)


# ----------------------- parameters & layout plumbing ------------------------

def init_params(key):
    """Raw parameters, torch-equivalent layout (conv rows = (kh,kw,ci), ci
    fastest, cols = out_c; linear = (in, out) with in rows in NCHW order)."""
    ks = jax.random.split(key, 14)

    def nrm(k, shape, scale=0.1):
        return (scale * jax.random.normal(k, shape)).astype(jnp.float32)

    p = {}
    p["w1"] = nrm(ks[0], (3 * 3 * 1, 8));    p["b1"] = nrm(ks[1], (8,))
    p["g1"] = jnp.ones((8,), jnp.float32);   p["be1"] = jnp.zeros((8,), jnp.float32)
    p["w2"] = nrm(ks[2], (3 * 3 * 8, 16));   p["b2"] = nrm(ks[3], (16,))
    p["g2"] = jnp.ones((16,), jnp.float32);  p["be2"] = jnp.zeros((16,), jnp.float32)
    p["w3"] = nrm(ks[4], (3 * 3 * 16, 32));  p["b3"] = nrm(ks[5], (32,))
    p["wl1_mu"] = nrm(ks[6], (3 * 3 * 32, 128));  p["bl1_mu"] = nrm(ks[7], (128,))
    p["wl2_mu"] = nrm(ks[8], (128, 8));           p["bl2_mu"] = nrm(ks[9], (8,))
    p["wl1_sg"] = nrm(ks[10], (3 * 3 * 32, 128)); p["bl1_sg"] = nrm(ks[11], (128,))
    p["wl2_sg"] = nrm(ks[12], (128, 8));          p["bl2_sg"] = nrm(ks[13], (8,))
    return p


def _round_weights_to_bf16(p):
    """Round the matrix weights to bf16-representable values once, so the
    bf16-stored kernel operands and the f32 reference use identical weights."""
    q = dict(p)
    for k in ("w1", "w2", "w3", "wl1_mu", "wl1_sg", "wl2_mu", "wl2_sg"):
        q[k] = p[k].astype(jnp.bfloat16).astype(jnp.float32)
    return q


def _strip_weight(w_flat, cin, cout, in_w, out_w, stride, lane_off):
    """Fold the kw taps, x-stride and channel mixing of a 3x3 conv into three
    dense matrices S[kh] of shape (in_w*cin, out_w*cout):
        S[kh][ix*cin + ci, ox*cout + co] = w[kh, kw, ci, co]
    where ix = stride*ox + kw + lane_off (dropped if outside [0, in_w))."""
    w = np.asarray(w_flat, np.float32).reshape(3, 3, cin, cout)
    S = np.zeros((3, in_w * cin, out_w * cout), np.float32)
    for kh in range(3):
        for kw in range(3):
            for ox in range(out_w):
                ix = stride * ox + kw + lane_off
                if 0 <= ix < in_w:
                    S[kh, ix * cin:(ix + 1) * cin, ox * cout:(ox + 1) * cout] = w[kh, kw]
    return S


def transform_params(p):
    """One-time layout plumbing.  All large matrices are stored bf16 (their
    values are already bf16-representable, so the cast is exact)."""
    f32 = np.float32
    tp = {}
    # conv strip weights (x taps / stride / channels folded in; y taps handled
    # by contiguous row slices inside the kernel).
    tp["w1r"] = jnp.asarray(_strip_weight(p["w1"], 1, 8, 30, 14, 2, 0), jnp.bfloat16)
    tp["w2r"] = jnp.asarray(_strip_weight(p["w2"], 8, 16, 14, 7, 2, -1), jnp.bfloat16)
    tp["w3r"] = jnp.asarray(_strip_weight(p["w3"], 16, 32, 7, 3, 2, 0), jnp.bfloat16)

    # 0/1 per-channel reduce+broadcast projectors for the two BatchNorms.
    lane = np.arange(112)
    m1 = (lane[:, None] % 8 == lane[None, :] % 8).astype(f32)
    m2 = (lane[:, None] % 16 == lane[None, :] % 16).astype(f32)
    tp["mm"] = jnp.asarray(np.stack([m1, m2]), jnp.bfloat16)        # exact 0/1

    # merged mu|sigma first linear, rows permuted from the NCHW-flatten order
    # (c*9 + oy*3 + ox) to the kernel's (oy, ox, c) order, split per oy3.
    wl1 = np.concatenate([np.asarray(p["wl1_mu"]), np.asarray(p["wl1_sg"])], axis=1)
    perm = np.array([c * 9 + oy * 3 + ox
                     for oy in range(3) for ox in range(3) for c in range(32)])
    tp["wl1"] = jnp.asarray(wl1[perm].reshape(3, 96, 256), jnp.bfloat16)

    wl2 = np.zeros((256, 16), f32)                    # block-diagonal merged head
    wl2[:128, :8] = np.asarray(p["wl2_mu"])
    wl2[128:, 8:] = np.asarray(p["wl2_sg"])
    tp["wl2"] = jnp.asarray(wl2, jnp.bfloat16)

    # all tiny per-channel vectors packed into one (9, 256) f32 input.
    vecs = np.zeros((9, 256), f32)
    vecs[0, :112] = np.tile(np.asarray(p["b1"]), 14)
    vecs[1, :112] = np.tile(np.asarray(p["g1"]), 14)
    vecs[2, :112] = np.tile(np.asarray(p["be1"]), 14)
    vecs[3, :112] = np.tile(np.asarray(p["b2"]), 7)
    vecs[4, :112] = np.tile(np.asarray(p["g2"]), 7)
    vecs[5, :112] = np.tile(np.asarray(p["be2"]), 7)
    vecs[6, :96] = np.tile(np.asarray(p["b3"]), 3)
    vecs[7, :256] = np.concatenate([np.asarray(p["bl1_mu"]), np.asarray(p["bl1_sg"])])
    vecs[8, :16] = np.concatenate([np.asarray(p["bl2_mu"]), np.asarray(p["bl2_sg"])])
    tp["vecs"] = jnp.asarray(vecs)
    return tp


# ----------------------- JAX wrapper -----------------------------------------

_ODD_FIRST = (1, 3, 5, 7, 9, 11, 13, 0, 2, 4, 6, 8, 10, 12)


def encoder_adv_forward(tp, x_nchw, z):
    B = x_nchw.shape[0]
    x = x_nchw[:, 0, :, :].astype(jnp.float32)                 # (B, 28, 28)
    xpad = jnp.pad(x, ((0, 0), (1, 1), (1, 1)))                # (B, 30, 30)
    # Three y-tap row strips of the padded input; output rows phase-ordered
    # (odd oy1 first) so conv2's taps become contiguous slices in-kernel.
    idx = jnp.asarray(_ODD_FIRST, jnp.int32)
    strips = []
    for kh in range(3):
        s = xpad[:, kh:kh + 27:2, :]                           # (B, 14, 30)
        strips.append(jnp.take(s, idx, axis=1).reshape(B * 14, 30))
    xs = jnp.stack(strips, axis=0)                             # (3, B*14, 30)

    return pl.pallas_call(
        _encoder_fused_kernel,
        out_shape=jax.ShapeDtypeStruct((B, 8), jnp.float32),
        in_specs=[_VMEM] * 9,
        out_specs=_VMEM,
    )(xs, z, tp["w1r"], tp["w2r"], tp["w3r"], tp["wl1"], tp["wl2"],
      tp["mm"], tp["vecs"])


# ----------------------- pure-JAX reference (correctness check) --------------

def im2col(x_nhwc, ksize, stride, pad):
    if pad:
        x_nhwc = jnp.pad(x_nhwc, ((0, 0), (pad, pad), (pad, pad), (0, 0)))
    B, H, W, C = x_nhwc.shape
    oh = (H - ksize) // stride + 1
    ow = (W - ksize) // stride + 1
    cols = []
    for i in range(ksize):
        for j in range(ksize):
            cols.append(x_nhwc[:, i:i + stride * oh:stride, j:j + stride * ow:stride, :])
    p = jnp.stack(cols, axis=3)
    return p.reshape(B * oh * ow, ksize * ksize * C), (B, oh, ow)


def _bn_ref(x, g, b):
    mean = jnp.mean(x, axis=0, keepdims=True)
    var = jnp.mean((x - mean) ** 2, axis=0, keepdims=True)     # biased (PyTorch BN)
    return (x - mean) * jax.lax.rsqrt(var + BN_EPS) * g + b


def _mm(a, b):
    return jnp.dot(a, b, precision=jax.lax.Precision.HIGHEST)


def reference_forward(p, x_nchw, z):
    x = jnp.transpose(x_nchw, (0, 2, 3, 1)).astype(jnp.float32)
    patches, (B, oh, ow) = im2col(x, 3, 2, 1)
    y = _mm(patches, p["w1"]) + p["b1"]
    x = _selu(_bn_ref(y, p["g1"], p["be1"])).reshape(B, oh, ow, 8)
    patches, (B, oh, ow) = im2col(x, 3, 2, 1)
    y = _mm(patches, p["w2"]) + p["b2"]
    x = _selu(_bn_ref(y, p["g2"], p["be2"])).reshape(B, oh, ow, 16)
    patches, (B, oh, ow) = im2col(x, 3, 2, 0)
    x = _selu(_mm(patches, p["w3"]) + p["b3"]).reshape(B, oh, ow, 32)
    flat = jnp.transpose(x, (0, 3, 1, 2)).reshape(B, 32 * oh * ow)
    mu = _mm(_selu(_mm(flat, p["wl1_mu"]) + p["bl1_mu"]), p["wl2_mu"]) + p["bl2_mu"]
    sg = _mm(_selu(_mm(flat, p["wl1_sg"]) + p["bl1_sg"]), p["wl2_sg"]) + p["bl2_sg"]
    return mu + z * jnp.exp(sg * 0.5)


if __name__ == "__main__":
    key = jax.random.PRNGKey(0)
    kx, kz, kp = jax.random.split(key, 3)

    # Input must be 28x28: flattened conv output is 3*3*32 = 288.
    x = jax.random.normal(kx, (2, 1, 28, 28), dtype=jnp.float32)
    # reparam's z ~ N(0, 1), shape (B, 8) (np.random.normal in the reference).
    z = jax.random.normal(kz, (2, 8), dtype=jnp.float32)

    params = _round_weights_to_bf16(init_params(kp))
    tparams = transform_params(params)

    out = jax.jit(encoder_adv_forward)(tparams, x, z)
    out = jax.block_until_ready(out)
    assert out.shape == (2, 8) and out.dtype == jnp.float32
    assert bool(jnp.all(jnp.isfinite(out)))

    # Validate the fused kernel against the straightforward pure-JAX forward.
    ref = reference_forward(params, x, z)
    assert bool(jnp.allclose(out, ref, atol=2e-3, rtol=2e-3))
    print("KERNEL_OK")
</pallas_src>

<mosaic_0001>
module attributes {stable_mosaic.version = 11 : i64} {
  func.func @_encoder_fused_kernel(%arg0: memref<3x28x30xf32, #tpu.memory_space<vmem>>, %arg1: memref<2x8xf32, #tpu.memory_space<vmem>>, %arg2: memref<3x30x112xbf16, #tpu.memory_space<vmem>>, %arg3: memref<3x112x112xbf16, #tpu.memory_space<vmem>>, %arg4: memref<3x112x96xbf16, #tpu.memory_space<vmem>>, %arg5: memref<3x96x256xbf16, #tpu.memory_space<vmem>>, %arg6: memref<256x16xbf16, #tpu.memory_space<vmem>>, %arg7: memref<2x112x112xbf16, #tpu.memory_space<vmem>>, %arg8: memref<9x256xf32, #tpu.memory_space<vmem>>, %arg9: memref<2x8xf32, #tpu.memory_space<vmem>>) attributes {dimension_semantics = [], scalar_prefetch = 0 : i64, scratch_operands = 0 : i64, tpu.core_type = #tpu.core_type<tc>} {
    %c0 = arith.constant 0 : index
    %c0_0 = arith.constant 0 : index
    %0 = vector.load %arg8[%c0, %c0_0] : memref<9x256xf32, #tpu.memory_space<vmem>>, vector<1x112xf32>
    %c1 = arith.constant 1 : index
    %c0_1 = arith.constant 0 : index
    %1 = vector.load %arg8[%c1, %c0_1] : memref<9x256xf32, #tpu.memory_space<vmem>>, vector<1x112xf32>
    %c2 = arith.constant 2 : index
    %c0_2 = arith.constant 0 : index
    %2 = vector.load %arg8[%c2, %c0_2] : memref<9x256xf32, #tpu.memory_space<vmem>>, vector<1x112xf32>
    %c3 = arith.constant 3 : index
    %c0_3 = arith.constant 0 : index
    %3 = vector.load %arg8[%c3, %c0_3] : memref<9x256xf32, #tpu.memory_space<vmem>>, vector<1x112xf32>
    %c4 = arith.constant 4 : index
    %c0_4 = arith.constant 0 : index
    %4 = vector.load %arg8[%c4, %c0_4] : memref<9x256xf32, #tpu.memory_space<vmem>>, vector<1x112xf32>
    %c5 = arith.constant 5 : index
    %c0_5 = arith.constant 0 : index
    %5 = vector.load %arg8[%c5, %c0_5] : memref<9x256xf32, #tpu.memory_space<vmem>>, vector<1x112xf32>
    %c6 = arith.constant 6 : index
    %c0_6 = arith.constant 0 : index
    %6 = vector.load %arg8[%c6, %c0_6] : memref<9x256xf32, #tpu.memory_space<vmem>>, vector<1x96xf32>
    %c7 = arith.constant 7 : index
    %c0_7 = arith.constant 0 : index
    %7 = vector.load %arg8[%c7, %c0_7] : memref<9x256xf32, #tpu.memory_space<vmem>>, vector<1x256xf32>
    %c8 = arith.constant 8 : index
    %c0_8 = arith.constant 0 : index
    %8 = vector.load %arg8[%c8, %c0_8] : memref<9x256xf32, #tpu.memory_space<vmem>>, vector<1x16xf32>
    %c0_9 = arith.constant 0 : index
    %c0_10 = arith.constant 0 : index
    %c0_11 = arith.constant 0 : index
    %9 = vector.load %arg3[%c0_9, %c0_10, %c0_11] : memref<3x112x112xbf16, #tpu.memory_space<vmem>>, vector<1x112x112xbf16>
    %10 = vector.shape_cast %9 : vector<1x112x112xbf16> to vector<112x112xbf16>
    %11 = arith.extf %10 : vector<112x112xbf16> to vector<112x112xf32>
    %c1_12 = arith.constant 1 : index
    %c0_13 = arith.constant 0 : index
    %c0_14 = arith.constant 0 : index
    %12 = vector.load %arg3[%c1_12, %c0_13, %c0_14] : memref<3x112x112xbf16, #tpu.memory_space<vmem>>, vector<1x112x112xbf16>
    %13 = vector.shape_cast %12 : vector<1x112x112xbf16> to vector<112x112xbf16>
    %14 = arith.extf %13 : vector<112x112xbf16> to vector<112x112xf32>
    %c2_15 = arith.constant 2 : index
    %c0_16 = arith.constant 0 : index
    %c0_17 = arith.constant 0 : index
    %15 = vector.load %arg3[%c2_15, %c0_16, %c0_17] : memref<3x112x112xbf16, #tpu.memory_space<vmem>>, vector<1x112x112xbf16>
    %16 = vector.shape_cast %15 : vector<1x112x112xbf16> to vector<112x112xbf16>
    %17 = arith.extf %16 : vector<112x112xbf16> to vector<112x112xf32>
    %c0_18 = arith.constant 0 : index
    %c0_19 = arith.constant 0 : index
    %c0_20 = arith.constant 0 : index
    %18 = vector.load %arg4[%c0_18, %c0_19, %c0_20] : memref<3x112x96xbf16, #tpu.memory_space<vmem>>, vector<1x112x96xbf16>
    %19 = vector.shape_cast %18 : vector<1x112x96xbf16> to vector<112x96xbf16>
    %20 = arith.extf %19 : vector<112x96xbf16> to vector<112x96xf32>
    %c1_21 = arith.constant 1 : index
    %c0_22 = arith.constant 0 : index
    %c0_23 = arith.constant 0 : index
    %21 = vector.load %arg4[%c1_21, %c0_22, %c0_23] : memref<3x112x96xbf16, #tpu.memory_space<vmem>>, vector<1x112x96xbf16>
    %22 = vector.shape_cast %21 : vector<1x112x96xbf16> to vector<112x96xbf16>
    %23 = arith.extf %22 : vector<112x96xbf16> to vector<112x96xf32>
    %c2_24 = arith.constant 2 : index
    %c0_25 = arith.constant 0 : index
    %c0_26 = arith.constant 0 : index
    %24 = vector.load %arg4[%c2_24, %c0_25, %c0_26] : memref<3x112x96xbf16, #tpu.memory_space<vmem>>, vector<1x112x96xbf16>
    %25 = vector.shape_cast %24 : vector<1x112x96xbf16> to vector<112x96xbf16>
    %26 = arith.extf %25 : vector<112x96xbf16> to vector<112x96xf32>
    %c0_27 = arith.constant 0 : index
    %c0_28 = arith.constant 0 : index
    %c0_29 = arith.constant 0 : index
    %27 = vector.load %arg5[%c0_27, %c0_28, %c0_29] : memref<3x96x256xbf16, #tpu.memory_space<vmem>>, vector<1x96x256xbf16>
    %28 = vector.shape_cast %27 : vector<1x96x256xbf16> to vector<96x256xbf16>
    %29 = arith.extf %28 : vector<96x256xbf16> to vector<96x256xf32>
    %c1_30 = arith.constant 1 : index
    %c0_31 = arith.constant 0 : index
    %c0_32 = arith.constant 0 : index
    %30 = vector.load %arg5[%c1_30, %c0_31, %c0_32] : memref<3x96x256xbf16, #tpu.memory_space<vmem>>, vector<1x96x256xbf16>
    %31 = vector.shape_cast %30 : vector<1x96x256xbf16> to vector<96x256xbf16>
    %32 = arith.extf %31 : vector<96x256xbf16> to vector<96x256xf32>
    %c2_33 = arith.constant 2 : index
    %c0_34 = arith.constant 0 : index
    %c0_35 = arith.constant 0 : index
    %33 = vector.load %arg5[%c2_33, %c0_34, %c0_35] : memref<3x96x256xbf16, #tpu.memory_space<vmem>>, vector<1x96x256xbf16>
    %34 = vector.shape_cast %33 : vector<1x96x256xbf16> to vector<96x256xbf16>
    %35 = arith.extf %34 : vector<96x256xbf16> to vector<96x256xf32>
    %c0_36 = arith.constant 0 : index
    %c0_37 = arith.constant 0 : index
    %36 = vector.load %arg6[%c0_36, %c0_37] : memref<256x16xbf16, #tpu.memory_space<vmem>>, vector<256x16xbf16>
    %37 = arith.extf %36 : vector<256x16xbf16> to vector<256x16xf32>
    %c0_38 = arith.constant 0 : index
    %c0_39 = arith.constant 0 : index
    %c0_40 = arith.constant 0 : index
    %38 = vector.load %arg7[%c0_38, %c0_39, %c0_40] : memref<2x112x112xbf16, #tpu.memory_space<vmem>>, vector<1x112x112xbf16>
    %39 = vector.shape_cast %38 : vector<1x112x112xbf16> to vector<112x112xbf16>
    %40 = arith.extf %39 : vector<112x112xbf16> to vector<112x112xf32>
    %c1_41 = arith.constant 1 : index
    %c0_42 = arith.constant 0 : index
    %c0_43 = arith.constant 0 : index
    %41 = vector.load %arg7[%c1_41, %c0_42, %c0_43] : memref<2x112x112xbf16, #tpu.memory_space<vmem>>, vector<1x112x112xbf16>
    %42 = vector.shape_cast %41 : vector<1x112x112xbf16> to vector<112x112xbf16>
    %43 = arith.extf %42 : vector<112x112xbf16> to vector<112x112xf32>
    %c0_44 = arith.constant 0 : index
    %c0_45 = arith.constant 0 : index
    %c0_46 = arith.constant 0 : index
    %44 = vector.load %arg0[%c0_44, %c0_45, %c0_46] : memref<3x28x30xf32, #tpu.memory_space<vmem>>, vector<1x28x30xf32>
    %45 = vector.shape_cast %44 : vector<1x28x30xf32> to vector<28x30xf32>
    %c0_47 = arith.constant 0 : index
    %c0_48 = arith.constant 0 : index
    %c0_49 = arith.constant 0 : index
    %46 = vector.load %arg2[%c0_47, %c0_48, %c0_49] : memref<3x30x112xbf16, #tpu.memory_space<vmem>>, vector<1x30x112xbf16>
    %47 = vector.shape_cast %46 : vector<1x30x112xbf16> to vector<30x112xbf16>
    %48 = arith.extf %47 : vector<30x112xbf16> to vector<30x112xf32>
    %cst = arith.constant dense<0.000000e+00> : vector<28x112xf32>
    %49 = tpu.matmul %45, %48, %cst {dimension_numbers = #tpu.dot_dimension_numbers<[1], [0], [0], [1], [0, 0, 1, 1], [], []>} : vector<28x30xf32>, vector<30x112xf32>, vector<28x112xf32> -> vector<28x112xf32>
    %c1_50 = arith.constant 1 : index
    %c0_51 = arith.constant 0 : index
    %c0_52 = arith.constant 0 : index
    %50 = vector.load %arg0[%c1_50, %c0_51, %c0_52] : memref<3x28x30xf32, #tpu.memory_space<vmem>>, vector<1x28x30xf32>
    %51 = vector.shape_cast %50 : vector<1x28x30xf32> to vector<28x30xf32>
    %c1_53 = arith.constant 1 : index
    %c0_54 = arith.constant 0 : index
    %c0_55 = arith.constant 0 : index
    %52 = vector.load %arg2[%c1_53, %c0_54, %c0_55] : memref<3x30x112xbf16, #tpu.memory_space<vmem>>, vector<1x30x112xbf16>
    %53 = vector.shape_cast %52 : vector<1x30x112xbf16> to vector<30x112xbf16>
    %54 = arith.extf %53 : vector<30x112xbf16> to vector<30x112xf32>
    %cst_56 = arith.constant dense<0.000000e+00> : vector<28x112xf32>
    %55 = tpu.matmul %51, %54, %cst_56 {dimension_numbers = #tpu.dot_dimension_numbers<[1], [0], [0], [1], [0, 0, 1, 1], [], []>} : vector<28x30xf32>, vector<30x112xf32>, vector<28x112xf32> -> vector<28x112xf32>
    %56 = arith.addf %49, %55 : vector<28x112xf32>
    %c2_57 = arith.constant 2 : index
    %c0_58 = arith.constant 0 : index
    %c0_59 = arith.constant 0 : index
    %57 = vector.load %arg0[%c2_57, %c0_58, %c0_59] : memref<3x28x30xf32, #tpu.memory_space<vmem>>, vector<1x28x30xf32>
    %58 = vector.shape_cast %57 : vector<1x28x30xf32> to vector<28x30xf32>
    %c2_60 = arith.constant 2 : index
    %c0_61 = arith.constant 0 : index
    %c0_62 = arith.constant 0 : index
    %59 = vector.load %arg2[%c2_60, %c0_61, %c0_62] : memref<3x30x112xbf16, #tpu.memory_space<vmem>>, vector<1x30x112xbf16>
    %60 = vector.shape_cast %59 : vector<1x30x112xbf16> to vector<30x112xbf16>
    %61 = arith.extf %60 : vector<30x112xbf16> to vector<30x112xf32>
    %cst_63 = arith.constant dense<0.000000e+00> : vector<28x112xf32>
    %62 = tpu.matmul %58, %61, %cst_63 {dimension_numbers = #tpu.dot_dimension_numbers<[1], [0], [0], [1], [0, 0, 1, 1], [], []>} : vector<28x30xf32>, vector<30x112xf32>, vector<28x112xf32> -> vector<28x112xf32>
    %63 = arith.addf %56, %62 : vector<28x112xf32>
    %64 = vector.broadcast %0 : vector<1x112xf32> to vector<28x112xf32>
    %65 = arith.addf %63, %64 : vector<28x112xf32>
    %cst_64 = arith.constant dense<0.000000e+00> : vector<112xf32>
    %66 = vector.multi_reduction <add>, %65, %cst_64 [0] : vector<28x112xf32> to vector<112xf32>
    %67 = vector.shape_cast %66 : vector<112xf32> to vector<1x112xf32>
    %68 = arith.mulf %65, %65 : vector<28x112xf32>
    %cst_65 = arith.constant dense<0.000000e+00> : vector<112xf32>
    %69 = vector.multi_reduction <add>, %68, %cst_65 [0] : vector<28x112xf32> to vector<112xf32>
    %70 = vector.shape_cast %69 : vector<112xf32> to vector<1x112xf32>
    %cst_66 = arith.constant dense<0.000000e+00> : vector<1x112xf32>
    %71 = tpu.matmul %67, %40, %cst_66 {dimension_numbers = #tpu.dot_dimension_numbers<[1], [0], [0], [1], [0, 0, 1, 1], [], []>} : vector<1x112xf32>, vector<112x112xf32>, vector<1x112xf32> -> vector<1x112xf32>
    %cst_67 = arith.constant 0.00255102036 : f32
    %72 = vector.broadcast %cst_67 : f32 to vector<1x112xf32>
    %73 = arith.mulf %71, %72 : vector<1x112xf32>
    %cst_68 = arith.constant dense<0.000000e+00> : vector<1x112xf32>
    %74 = tpu.matmul %70, %40, %cst_68 {dimension_numbers = #tpu.dot_dimension_numbers<[1], [0], [0], [1], [0, 0, 1, 1], [], []>} : vector<1x112xf32>, vector<112x112xf32>, vector<1x112xf32> -> vector<1x112xf32>
    %cst_69 = arith.constant 0.00255102036 : f32
    %75 = vector.broadcast %cst_69 : f32 to vector<1x112xf32>
    %76 = arith.mulf %74, %75 : vector<1x112xf32>
    %77 = arith.mulf %73, %73 : vector<1x112xf32>
    %78 = arith.subf %76, %77 : vector<1x112xf32>
    %cst_70 = arith.constant 9.99999974E-6 : f32
    %79 = vector.broadcast %cst_70 : f32 to vector<1x112xf32>
    %80 = arith.addf %78, %79 : vector<1x112xf32>
    %81 = math.rsqrt %80 : vector<1x112xf32>
    %82 = arith.mulf %1, %81 : vector<1x112xf32>
    %83 = arith.mulf %73, %82 : vector<1x112xf32>
    %84 = arith.subf %2, %83 : vector<1x112xf32>
    %85 = vector.broadcast %82 : vector<1x112xf32> to vector<28x112xf32>
    %86 = arith.mulf %65, %85 : vector<28x112xf32>
    %87 = vector.broadcast %84 : vector<1x112xf32> to vector<28x112xf32>
    %88 = arith.addf %86, %87 : vector<28x112xf32>
    %cst_71 = arith.constant 0.000000e+00 : f32
    %89 = vector.broadcast %cst_71 : f32 to vector<28x112xf32>
    %90 = arith.cmpf ogt, %88, %89 : vector<28x112xf32>
    %91 = math.exp %88 : vector<28x112xf32>
    %cst_72 = arith.constant 1.000000e+00 : f32
    %92 = vector.broadcast %cst_72 : f32 to vector<28x112xf32>
    %93 = arith.subf %91, %92 : vector<28x112xf32>
    %cst_73 = arith.constant 1.67326319 : f32
    %94 = vector.broadcast %cst_73 : f32 to vector<28x112xf32>
    %95 = arith.mulf %94, %93 : vector<28x112xf32>
    %96 = arith.select %90, %88, %95 : vector<28x112xi1>, vector<28x112xf32>
    %cst_74 = arith.constant 1.05070102 : f32
    %97 = vector.broadcast %cst_74 : f32 to vector<28x112xf32>
    %98 = arith.mulf %97, %96 : vector<28x112xf32>
    %cst_75 = arith.constant 0.000000e+00 : f32
    %99 = vector.broadcast %cst_75 : f32 to vector<1x112xf32>
    %100 = vector.extract_strided_slice %98 {offsets = [0, 0], sizes = [14, 112], strides = [1, 1]} : vector<28x112xf32> to vector<14x112xf32>
    %101 = vector.extract_strided_slice %100 {offsets = [0, 0], sizes = [6, 112], strides = [1, 1]} : vector<14x112xf32> to vector<6x112xf32>
    %102 = tpu.concatenate %99, %101 in 0 : vector<1x112xf32>, vector<6x112xf32> -> vector<7x112xf32>
    %103 = vector.extract_strided_slice %100 {offsets = [7, 0], sizes = [7, 112], strides = [1, 1]} : vector<14x112xf32> to vector<7x112xf32>
    %104 = vector.extract_strided_slice %100 {offsets = [0, 0], sizes = [7, 112], strides = [1, 1]} : vector<14x112xf32> to vector<7x112xf32>
    %cst_76 = arith.constant dense<0.000000e+00> : vector<7x112xf32>
    %105 = tpu.matmul %102, %11, %cst_76 {dimension_numbers = #tpu.dot_dimension_numbers<[1], [0], [0], [1], [0, 0, 1, 1], [], []>} : vector<7x112xf32>, vector<112x112xf32>, vector<7x112xf32> -> vector<7x112xf32>
    %cst_77 = arith.constant dense<0.000000e+00> : vector<7x112xf32>
    %106 = tpu.matmul %103, %14, %cst_77 {dimension_numbers = #tpu.dot_dimension_numbers<[1], [0], [0], [1], [0, 0, 1, 1], [], []>} : vector<7x112xf32>, vector<112x112xf32>, vector<7x112xf32> -> vector<7x112xf32>
    %107 = arith.addf %105, %106 : vector<7x112xf32>
    %cst_78 = arith.constant dense<0.000000e+00> : vector<7x112xf32>
    %108 = tpu.matmul %104, %17, %cst_78 {dimension_numbers = #tpu.dot_dimension_numbers<[1], [0], [0], [1], [0, 0, 1, 1], [], []>} : vector<7x112xf32>, vector<112x112xf32>, vector<7x112xf32> -> vector<7x112xf32>
    %109 = arith.addf %107, %108 : vector<7x112xf32>
    %110 = vector.extract_strided_slice %98 {offsets = [14, 0], sizes = [14, 112], strides = [1, 1]} : vector<28x112xf32> to vector<14x112xf32>
    %111 = vector.extract_strided_slice %110 {offsets = [0, 0], sizes = [6, 112], strides = [1, 1]} : vector<14x112xf32> to vector<6x112xf32>
    %112 = tpu.concatenate %99, %111 in 0 : vector<1x112xf32>, vector<6x112xf32> -> vector<7x112xf32>
    %113 = vector.extract_strided_slice %110 {offsets = [7, 0], sizes = [7, 112], strides = [1, 1]} : vector<14x112xf32> to vector<7x112xf32>
    %114 = vector.extract_strided_slice %110 {offsets = [0, 0], sizes = [7, 112], strides = [1, 1]} : vector<14x112xf32> to vector<7x112xf32>
    %cst_79 = arith.constant dense<0.000000e+00> : vector<7x112xf32>
    %115 = tpu.matmul %112, %11, %cst_79 {dimension_numbers = #tpu.dot_dimension_numbers<[1], [0], [0], [1], [0, 0, 1, 1], [], []>} : vector<7x112xf32>, vector<112x112xf32>, vector<7x112xf32> -> vector<7x112xf32>
    %cst_80 = arith.constant dense<0.000000e+00> : vector<7x112xf32>
    %116 = tpu.matmul %113, %14, %cst_80 {dimension_numbers = #tpu.dot_dimension_numbers<[1], [0], [0], [1], [0, 0, 1, 1], [], []>} : vector<7x112xf32>, vector<112x112xf32>, vector<7x112xf32> -> vector<7x112xf32>
    %117 = arith.addf %115, %116 : vector<7x112xf32>
    %cst_81 = arith.constant dense<0.000000e+00> : vector<7x112xf32>
    %118 = tpu.matmul %114, %17, %cst_81 {dimension_numbers = #tpu.dot_dimension_numbers<[1], [0], [0], [1], [0, 0, 1, 1], [], []>} : vector<7x112xf32>, vector<112x112xf32>, vector<7x112xf32> -> vector<7x112xf32>
    %119 = arith.addf %117, %118 : vector<7x112xf32>
    %120 = tpu.concatenate %109, %119 in 0 : vector<7x112xf32>, vector<7x112xf32> -> vector<14x112xf32>
    %121 = vector.broadcast %3 : vector<1x112xf32> to vector<14x112xf32>
    %122 = arith.addf %120, %121 : vector<14x112xf32>
    %cst_82 = arith.constant dense<0.000000e+00> : vector<112xf32>
    %123 = vector.multi_reduction <add>, %122, %cst_82 [0] : vector<14x112xf32> to vector<112xf32>
    %124 = vector.shape_cast %123 : vector<112xf32> to vector<1x112xf32>
    %125 = arith.mulf %122, %122 : vector<14x112xf32>
    %cst_83 = arith.constant dense<0.000000e+00> : vector<112xf32>
    %126 = vector.multi_reduction <add>, %125, %cst_83 [0] : vector<14x112xf32> to vector<112xf32>
    %127 = vector.shape_cast %126 : vector<112xf32> to vector<1x112xf32>
    %cst_84 = arith.constant dense<0.000000e+00> : vector<1x112xf32>
    %128 = tpu.matmul %124, %43, %cst_84 {dimension_numbers = #tpu.dot_dimension_numbers<[1], [0], [0], [1], [0, 0, 1, 1], [], []>} : vector<1x112xf32>, vector<112x112xf32>, vector<1x112xf32> -> vector<1x112xf32>
    %cst_85 = arith.constant 0.0102040814 : f32
    %129 = vector.broadcast %cst_85 : f32 to vector<1x112xf32>
    %130 = arith.mulf %128, %129 : vector<1x112xf32>
    %cst_86 = arith.constant dense<0.000000e+00> : vector<1x112xf32>
    %131 = tpu.matmul %127, %43, %cst_86 {dimension_numbers = #tpu.dot_dimension_numbers<[1], [0], [0], [1], [0, 0, 1, 1], [], []>} : vector<1x112xf32>, vector<112x112xf32>, vector<1x112xf32> -> vector<1x112xf32>
    %cst_87 = arith.constant 0.0102040814 : f32
    %132 = vector.broadcast %cst_87 : f32 to vector<1x112xf32>
    %133 = arith.mulf %131, %132 : vector<1x112xf32>
    %134 = arith.mulf %130, %130 : vector<1x112xf32>
    %135 = arith.subf %133, %134 : vector<1x112xf32>
    %cst_88 = arith.constant 9.99999974E-6 : f32
    %136 = vector.broadcast %cst_88 : f32 to vector<1x112xf32>
    %137 = arith.addf %135, %136 : vector<1x112xf32>
    %138 = math.rsqrt %137 : vector<1x112xf32>
    %139 = arith.mulf %4, %138 : vector<1x112xf32>
    %140 = arith.mulf %130, %139 : vector<1x112xf32>
    %141 = arith.subf %5, %140 : vector<1x112xf32>
    %142 = vector.broadcast %139 : vector<1x112xf32> to vector<14x112xf32>
    %143 = arith.mulf %122, %142 : vector<14x112xf32>
    %144 = vector.broadcast %141 : vector<1x112xf32> to vector<14x112xf32>
    %145 = arith.addf %143, %144 : vector<14x112xf32>
    %cst_89 = arith.constant 0.000000e+00 : f32
    %146 = vector.broadcast %cst_89 : f32 to vector<14x112xf32>
    %147 = arith.cmpf ogt, %145, %146 : vector<14x112xf32>
    %148 = math.exp %145 : vector<14x112xf32>
    %cst_90 = arith.constant 1.000000e+00 : f32
    %149 = vector.broadcast %cst_90 : f32 to vector<14x112xf32>
    %150 = arith.subf %148, %149 : vector<14x112xf32>
    %cst_91 = arith.constant 1.67326319 : f32
    %151 = vector.broadcast %cst_91 : f32 to vector<14x112xf32>
    %152 = arith.mulf %151, %150 : vector<14x112xf32>
    %153 = arith.select %147, %145, %152 : vector<14x112xi1>, vector<14x112xf32>
    %cst_92 = arith.constant 1.05070102 : f32
    %154 = vector.broadcast %cst_92 : f32 to vector<14x112xf32>
    %155 = arith.mulf %154, %153 : vector<14x112xf32>
    %156 = vector.extract_strided_slice %155 {offsets = [0, 0], sizes = [7, 112], strides = [1, 1]} : vector<14x112xf32> to vector<7x112xf32>
    %157 = vector.extract_strided_slice %156 {offsets = [0, 0], sizes = [1, 112], strides = [1, 1]} : vector<7x112xf32> to vector<1x112xf32>
    %158 = vector.extract_strided_slice %156 {offsets = [2, 0], sizes = [1, 112], strides = [1, 1]} : vector<7x112xf32> to vector<1x112xf32>
    %159 = vector.extract_strided_slice %156 {offsets = [4, 0], sizes = [1, 112], strides = [1, 1]} : vector<7x112xf32> to vector<1x112xf32>
    %160 = tpu.concatenate %157, %158, %159 in 0 : vector<1x112xf32>, vector<1x112xf32>, vector<1x112xf32> -> vector<3x112xf32>
    %cst_93 = arith.constant dense<0.000000e+00> : vector<3x96xf32>
    %161 = tpu.matmul %160, %20, %cst_93 {dimension_numbers = #tpu.dot_dimension_numbers<[1], [0], [0], [1], [0, 0, 1, 1], [], []>} : vector<3x112xf32>, vector<112x96xf32>, vector<3x96xf32> -> vector<3x96xf32>
    %162 = vector.extract_strided_slice %156 {offsets = [1, 0], sizes = [1, 112], strides = [1, 1]} : vector<7x112xf32> to vector<1x112xf32>
    %163 = vector.extract_strided_slice %156 {offsets = [3, 0], sizes = [1, 112], strides = [1, 1]} : vector<7x112xf32> to vector<1x112xf32>
    %164 = vector.extract_strided_slice %156 {offsets = [5, 0], sizes = [1, 112], strides = [1, 1]} : vector<7x112xf32> to vector<1x112xf32>
    %165 = tpu.concatenate %162, %163, %164 in 0 : vector<1x112xf32>, vector<1x112xf32>, vector<1x112xf32> -> vector<3x112xf32>
    %cst_94 = arith.constant dense<0.000000e+00> : vector<3x96xf32>
    %166 = tpu.matmul %165, %23, %cst_94 {dimension_numbers = #tpu.dot_dimension_numbers<[1], [0], [0], [1], [0, 0, 1, 1], [], []>} : vector<3x112xf32>, vector<112x96xf32>, vector<3x96xf32> -> vector<3x96xf32>
    %167 = arith.addf %161, %166 : vector<3x96xf32>
    %168 = vector.extract_strided_slice %156 {offsets = [2, 0], sizes = [1, 112], strides = [1, 1]} : vector<7x112xf32> to vector<1x112xf32>
    %169 = vector.extract_strided_slice %156 {offsets = [4, 0], sizes = [1, 112], strides = [1, 1]} : vector<7x112xf32> to vector<1x112xf32>
    %170 = vector.extract_strided_slice %156 {offsets = [6, 0], sizes = [1, 112], strides = [1, 1]} : vector<7x112xf32> to vector<1x112xf32>
    %171 = tpu.concatenate %168, %169, %170 in 0 : vector<1x112xf32>, vector<1x112xf32>, vector<1x112xf32> -> vector<3x112xf32>
    %cst_95 = arith.constant dense<0.000000e+00> : vector<3x96xf32>
    %172 = tpu.matmul %171, %26, %cst_95 {dimension_numbers = #tpu.dot_dimension_numbers<[1], [0], [0], [1], [0, 0, 1, 1], [], []>} : vector<3x112xf32>, vector<112x96xf32>, vector<3x96xf32> -> vector<3x96xf32>
    %173 = arith.addf %167, %172 : vector<3x96xf32>
    %174 = vector.broadcast %6 : vector<1x96xf32> to vector<3x96xf32>
    %175 = arith.addf %173, %174 : vector<3x96xf32>
    %cst_96 = arith.constant 0.000000e+00 : f32
    %176 = vector.broadcast %cst_96 : f32 to vector<3x96xf32>
    %177 = arith.cmpf ogt, %175, %176 : vector<3x96xf32>
    %178 = math.exp %175 : vector<3x96xf32>
    %cst_97 = arith.constant 1.000000e+00 : f32
    %179 = vector.broadcast %cst_97 : f32 to vector<3x96xf32>
    %180 = arith.subf %178, %179 : vector<3x96xf32>
    %cst_98 = arith.constant 1.67326319 : f32
    %181 = vector.broadcast %cst_98 : f32 to vector<3x96xf32>
    %182 = arith.mulf %181, %180 : vector<3x96xf32>
    %183 = arith.select %177, %175, %182 : vector<3x96xi1>, vector<3x96xf32>
    %cst_99 = arith.constant 1.05070102 : f32
    %184 = vector.broadcast %cst_99 : f32 to vector<3x96xf32>
    %185 = arith.mulf %184, %183 : vector<3x96xf32>
    %186 = vector.extract_strided_slice %185 {offsets = [0, 0], sizes = [1, 96], strides = [1, 1]} : vector<3x96xf32> to vector<1x96xf32>
    %cst_100 = arith.constant dense<0.000000e+00> : vector<1x256xf32>
    %187 = tpu.matmul %186, %29, %cst_100 {dimension_numbers = #tpu.dot_dimension_numbers<[1], [0], [0], [1], [0, 0, 1, 1], [], []>} : vector<1x96xf32>, vector<96x256xf32>, vector<1x256xf32> -> vector<1x256xf32>
    %188 = vector.extract_strided_slice %185 {offsets = [1, 0], sizes = [1, 96], strides = [1, 1]} : vector<3x96xf32> to vector<1x96xf32>
    %cst_101 = arith.constant dense<0.000000e+00> : vector<1x256xf32>
    %189 = tpu.matmul %188, %32, %cst_101 {dimension_numbers = #tpu.dot_dimension_numbers<[1], [0], [0], [1], [0, 0, 1, 1], [], []>} : vector<1x96xf32>, vector<96x256xf32>, vector<1x256xf32> -> vector<1x256xf32>
    %190 = arith.addf %187, %189 : vector<1x256xf32>
    %191 = vector.extract_strided_slice %185 {offsets = [2, 0], sizes = [1, 96], strides = [1, 1]} : vector<3x96xf32> to vector<1x96xf32>
    %cst_102 = arith.constant dense<0.000000e+00> : vector<1x256xf32>
    %192 = tpu.matmul %191, %35, %cst_102 {dimension_numbers = #tpu.dot_dimension_numbers<[1], [0], [0], [1], [0, 0, 1, 1], [], []>} : vector<1x96xf32>, vector<96x256xf32>, vector<1x256xf32> -> vector<1x256xf32>
    %193 = arith.addf %190, %192 : vector<1x256xf32>
    %194 = vector.extract_strided_slice %155 {offsets = [7, 0], sizes = [7, 112], strides = [1, 1]} : vector<14x112xf32> to vector<7x112xf32>
    %195 = vector.extract_strided_slice %194 {offsets = [0, 0], sizes = [1, 112], strides = [1, 1]} : vector<7x112xf32> to vector<1x112xf32>
    %196 = vector.extract_strided_slice %194 {offsets = [2, 0], sizes = [1, 112], strides = [1, 1]} : vector<7x112xf32> to vector<1x112xf32>
    %197 = vector.extract_strided_slice %194 {offsets = [4, 0], sizes = [1, 112], strides = [1, 1]} : vector<7x112xf32> to vector<1x112xf32>
    %198 = tpu.concatenate %195, %196, %197 in 0 : vector<1x112xf32>, vector<1x112xf32>, vector<1x112xf32> -> vector<3x112xf32>
    %cst_103 = arith.constant dense<0.000000e+00> : vector<3x96xf32>
    %199 = tpu.matmul %198, %20, %cst_103 {dimension_numbers = #tpu.dot_dimension_numbers<[1], [0], [0], [1], [0, 0, 1, 1], [], []>} : vector<3x112xf32>, vector<112x96xf32>, vector<3x96xf32> -> vector<3x96xf32>
    %200 = vector.extract_strided_slice %194 {offsets = [1, 0], sizes = [1, 112], strides = [1, 1]} : vector<7x112xf32> to vector<1x112xf32>
    %201 = vector.extract_strided_slice %194 {offsets = [3, 0], sizes = [1, 112], strides = [1, 1]} : vector<7x112xf32> to vector<1x112xf32>
    %202 = vector.extract_strided_slice %194 {offsets = [5, 0], sizes = [1, 112], strides = [1, 1]} : vector<7x112xf32> to vector<1x112xf32>
    %203 = tpu.concatenate %200, %201, %202 in 0 : vector<1x112xf32>, vector<1x112xf32>, vector<1x112xf32> -> vector<3x112xf32>
    %cst_104 = arith.constant dense<0.000000e+00> : vector<3x96xf32>
    %204 = tpu.matmul %203, %23, %cst_104 {dimension_numbers = #tpu.dot_dimension_numbers<[1], [0], [0], [1], [0, 0, 1, 1], [], []>} : vector<3x112xf32>, vector<112x96xf32>, vector<3x96xf32> -> vector<3x96xf32>
    %205 = arith.addf %199, %204 : vector<3x96xf32>
    %206 = vector.extract_strided_slice %194 {offsets = [2, 0], sizes = [1, 112], strides = [1, 1]} : vector<7x112xf32> to vector<1x112xf32>
    %207 = vector.extract_strided_slice %194 {offsets = [4, 0], sizes = [1, 112], strides = [1, 1]} : vector<7x112xf32> to vector<1x112xf32>
    %208 = vector.extract_strided_slice %194 {offsets = [6, 0], sizes = [1, 112], strides = [1, 1]} : vector<7x112xf32> to vector<1x112xf32>
    %209 = tpu.concatenate %206, %207, %208 in 0 : vector<1x112xf32>, vector<1x112xf32>, vector<1x112xf32> -> vector<3x112xf32>
    %cst_105 = arith.constant dense<0.000000e+00> : vector<3x96xf32>
    %210 = tpu.matmul %209, %26, %cst_105 {dimension_numbers = #tpu.dot_dimension_numbers<[1], [0], [0], [1], [0, 0, 1, 1], [], []>} : vector<3x112xf32>, vector<112x96xf32>, vector<3x96xf32> -> vector<3x96xf32>
    %211 = arith.addf %205, %210 : vector<3x96xf32>
    %212 = vector.broadcast %6 : vector<1x96xf32> to vector<3x96xf32>
    %213 = arith.addf %211, %212 : vector<3x96xf32>
    %cst_106 = arith.constant 0.000000e+00 : f32
    %214 = vector.broadcast %cst_106 : f32 to vector<3x96xf32>
    %215 = arith.cmpf ogt, %213, %214 : vector<3x96xf32>
    %216 = math.exp %213 : vector<3x96xf32>
    %cst_107 = arith.constant 1.000000e+00 : f32
    %217 = vector.broadcast %cst_107 : f32 to vector<3x96xf32>
    %218 = arith.subf %216, %217 : vector<3x96xf32>
    %cst_108 = arith.constant 1.67326319 : f32
    %219 = vector.broadcast %cst_108 : f32 to vector<3x96xf32>
    %220 = arith.mulf %219, %218 : vector<3x96xf32>
    %221 = arith.select %215, %213, %220 : vector<3x96xi1>, vector<3x96xf32>
    %cst_109 = arith.constant 1.05070102 : f32
    %222 = vector.broadcast %cst_109 : f32 to vector<3x96xf32>
    %223 = arith.mulf %222, %221 : vector<3x96xf32>
    %224 = vector.extract_strided_slice %223 {offsets = [0, 0], sizes = [1, 96], strides = [1, 1]} : vector<3x96xf32> to vector<1x96xf32>
    %cst_110 = arith.constant dense<0.000000e+00> : vector<1x256xf32>
    %225 = tpu.matmul %224, %29, %cst_110 {dimension_numbers = #tpu.dot_dimension_numbers<[1], [0], [0], [1], [0, 0, 1, 1], [], []>} : vector<1x96xf32>, vector<96x256xf32>, vector<1x256xf32> -> vector<1x256xf32>
    %226 = vector.extract_strided_slice %223 {offsets = [1, 0], sizes = [1, 96], strides = [1, 1]} : vector<3x96xf32> to vector<1x96xf32>
    %cst_111 = arith.constant dense<0.000000e+00> : vector<1x256xf32>
    %227 = tpu.matmul %226, %32, %cst_111 {dimension_numbers = #tpu.dot_dimension_numbers<[1], [0], [0], [1], [0, 0, 1, 1], [], []>} : vector<1x96xf32>, vector<96x256xf32>, vector<1x256xf32> -> vector<1x256xf32>
    %228 = arith.addf %225, %227 : vector<1x256xf32>
    %229 = vector.extract_strided_slice %223 {offsets = [2, 0], sizes = [1, 96], strides = [1, 1]} : vector<3x96xf32> to vector<1x96xf32>
    %cst_112 = arith.constant dense<0.000000e+00> : vector<1x256xf32>
    %230 = tpu.matmul %229, %35, %cst_112 {dimension_numbers = #tpu.dot_dimension_numbers<[1], [0], [0], [1], [0, 0, 1, 1], [], []>} : vector<1x96xf32>, vector<96x256xf32>, vector<1x256xf32> -> vector<1x256xf32>
    %231 = arith.addf %228, %230 : vector<1x256xf32>
    %232 = tpu.concatenate %193, %231 in 0 : vector<1x256xf32>, vector<1x256xf32> -> vector<2x256xf32>
    %233 = vector.broadcast %7 : vector<1x256xf32> to vector<2x256xf32>
    %234 = arith.addf %232, %233 : vector<2x256xf32>
    %cst_113 = arith.constant 0.000000e+00 : f32
    %235 = vector.broadcast %cst_113 : f32 to vector<2x256xf32>
    %236 = arith.cmpf ogt, %234, %235 : vector<2x256xf32>
    %237 = math.exp %234 : vector<2x256xf32>
    %cst_114 = arith.constant 1.000000e+00 : f32
    %238 = vector.broadcast %cst_114 : f32 to vector<2x256xf32>
    %239 = arith.subf %237, %238 : vector<2x256xf32>
    %cst_115 = arith.constant 1.67326319 : f32
    %240 = vector.broadcast %cst_115 : f32 to vector<2x256xf32>
    %241 = arith.mulf %240, %239 : vector<2x256xf32>
    %242 = arith.select %236, %234, %241 : vector<2x256xi1>, vector<2x256xf32>
    %cst_116 = arith.constant 1.05070102 : f32
    %243 = vector.broadcast %cst_116 : f32 to vector<2x256xf32>
    %244 = arith.mulf %243, %242 : vector<2x256xf32>
    %cst_117 = arith.constant dense<0.000000e+00> : vector<2x16xf32>
    %245 = tpu.matmul %244, %37, %cst_117 {dimension_numbers = #tpu.dot_dimension_numbers<[1], [0], [0], [1], [0, 0, 1, 1], [], []>} : vector<2x256xf32>, vector<256x16xf32>, vector<2x16xf32> -> vector<2x16xf32>
    %246 = vector.broadcast %8 : vector<1x16xf32> to vector<2x16xf32>
    %247 = arith.addf %245, %246 : vector<2x16xf32>
    %248 = vector.extract_strided_slice %247 {offsets = [0, 0], sizes = [2, 8], strides = [1, 1]} : vector<2x16xf32> to vector<2x8xf32>
    %249 = vector.extract_strided_slice %247 {offsets = [0, 8], sizes = [2, 8], strides = [1, 1]} : vector<2x16xf32> to vector<2x8xf32>
    %c0_118 = arith.constant 0 : index
    %c0_119 = arith.constant 0 : index
    %250 = vector.load %arg1[%c0_118, %c0_119] : memref<2x8xf32, #tpu.memory_space<vmem>>, vector<2x8xf32>
    %cst_120 = arith.constant 5.000000e-01 : f32
    %251 = vector.broadcast %cst_120 : f32 to vector<2x8xf32>
    %252 = arith.mulf %249, %251 : vector<2x8xf32>
    %253 = math.exp %252 : vector<2x8xf32>
    %254 = arith.mulf %250, %253 : vector<2x8xf32>
    %255 = arith.addf %248, %254 : vector<2x8xf32>
    %c0_121 = arith.constant 0 : index
    %c0_122 = arith.constant 0 : index
    %256 = vector.load %arg9[%c0_121, %c0_122] : memref<2x8xf32, #tpu.memory_space<vmem>>, vector<2x8xf32>
    tpu.vector_store %arg9[%c0_121, %c0_122], %255 {strides = array<i32>} : memref<2x8xf32, #tpu.memory_space<vmem>>, vector<2x8xf32>,
    return
  }
}

</mosaic_0001>

<bundles_post_ra>
// kernel: encoder_adv_forward.1
= control target key start
LH: loop header
LB: loop body
LE: loop exit
PB: predicated region body
PF: predicated region fallthrough
CT: control target
= control target key end

     0   :  { %vm485_vm0 = vcmask 1045504   ;;  %vm472_vm1 = vcmask 244736   ;;  %s6030_s0 = inlined_call_operand.vmem [shape: f32[3,28,30], index: 0, kind: input, shape index: {}]   ;;  %s6031_s1 = inlined_call_operand.vmem [shape: f32[2,8], index: 1, kind: input, shape index: {}]   ;;  %s6032_s2 = inlined_call_operand.vmem [shape: bf16[3,30,112], index: 2, kind: input, shape index: {}]   ;;  %s6033_s3 = inlined_call_operand.vmem [shape: bf16[3,112,112], index: 3, kind: input, shape index: {}]   ;;  %s6034_s4 = inlined_call_operand.vmem [shape: bf16[3,112,96], index: 4, kind: input, shape index: {}]   ;;  %s6035_s5 = inlined_call_operand.vmem [shape: bf16[3,96,256], index: 5, kind: input, shape index: {}]   ;;  %s6036_s6 = inlined_call_operand.vmem [shape: bf16[256,16], index: 6, kind: input, shape index: {}]   ;;  %s6037_s7 = inlined_call_operand.vmem [shape: bf16[2,112,112], index: 7, kind: input, shape index: {}]   ;;  %s6038_s8 = inlined_call_operand.vmem [shape: f32[9,256], index: 8, kind: input, shape index: {}]   ;;  %s6039_s9 = inlined_call_operand.hbm [shape: f32[2,8], index: 9, kind: output, shape index: {}]  }
   0x1   :  { %v2862_v0 = vld [vmem:[%s6032_s2 + $0x1c] sm:$0x7]  ;;  %v2861_v1 = vld [vmem:[%s6032_s2 + $0x8] ss:$16 sps:$4 sm:$0xff]   ;;  %v3286_v2 = vld [vmem:[%s6032_s2 + $0x10] sm:$0xff]  }
   0x2   :  { %v471_v3 = vunpack.c.l.bf16 %v2862_v0  ;;  %v470_v4 = vunpack.c.h.bf16 %v2861_v1  ;;  %v2855_v5 = vld [vmem:[%s6030_s0 + $0x20] sm:$0xff]  ;;  %v3213_v6 = vunpack.c.h.bf16 %v3286_v2  ;;  %v453_v7 = vld [vmem:[%s6032_s2 + $0xc] sm:$0x7]  ;;  %v3212_v8 = vunpack.c.l.bf16 %v3286_v2 }
   0x3   :  { %3595 = vmatprep.mubr.msk.f32.mxu1 %vm472_vm1, %v2855_v5 }
   0x4   :  { %3587 = vmatprep.subr.msk.mxu1 %vm485_vm0, %v471_v3 }
   0x5   :  { %3588 = vmatpush3.msk.msra.mxu1 %vm485_vm0, %v471_v3 }
   0x6   :  { %3589 = vmatprep.subr.mxu1 %v470_v4 }
   0x7   :  { %3590 = vmatpush3.msra.mxu1 %v470_v4 }
   0x8   :  { %14 = vsyncpa [#allocation3], 0  ;;  %3591 = vmatprep.subr.mxu1 %v3213_v6  ;;  %v457_v9 = vunpack.c.l.bf16 %v453_v7  ;;  %v2856_v10 = vld [vmem:[%s6030_s0 + $0x28] sm:$0xff]  ;;  %v3207_v11 = vld [vmem:[%s6032_s2] sm:$0xff]   ;;  %v456_v12 = vunpack.c.l.bf16 %v2861_v1  ;;  %v6129_v34 = vmov 0.0   ;;  %vm4178_vm2 = vmmov 0  }
   0x9   :  { %3592 = vmatpush3.msra.mxu1 %v3213_v6  ;;  %v2857_v13 = vld [vmem:[%s6030_s0 + $0x30] sm:$0xff]  ;;  %v3209_v14 = vunpack.c.h.bf16 %v3207_v11  ;;  %v2858_v15 = vld [vmem:[%s6030_s0 + $0x38] sm:$0xf]  ;;  %v2880_v16 = vld [vmem:[%s6032_s2 + $0x2c] sm:$0x7]  ;;  %v3208_v17 = vunpack.c.l.bf16 %v3207_v11  ;;  %3660 = vmatprep.subr.mxu0 %v6129_v34  ;;  %vm796_vm3 = vcmask 916480  }
   0xa   :  { %3593 = vmatprep.subr.mxu1 %v3212_v8  ;;  %v446_v18 = vld [vmem:[%s6030_s0] sm:$0xff]  ;;  %v2879_v19 = vld [vmem:[%s6032_s2 + $0x28] sm:$0xf]  ;;  %v687_v20 = vunpack.c.l.bf16 %v2880_v16  ;;  %v448_v24 = vld [vmem:[%s6030_s0 + $0x10] sm:$0xff]  ;;  %3688 = vmatprep.mubr.msk.f32.mxu0 %vm4178_vm2, %v6129_v34  ;;  %vm802_vm4 = vcmask 912384   ;;  %vm1030_vm7 = vcmask 1040384  }
   0xb   :  { %3594 = vmatpush3.msra.mxu1 %v3212_v8  ;;  %v447_v21 = vld [vmem:[%s6030_s0 + $0x8] sm:$0xff]  ;;  %v3287_v22 = vld [vmem:[%s6032_s2 + $0x20] sm:$0xff]   ;;  %v686_v23 = vunpack.c.l.bf16 %v2879_v19  ;;  %v449_v26 = vld [vmem:[%s6030_s0 + $0x18] sm:$0xf]  ;;  %vm1254_vm10 = vcmask 1042432   ;;  %vm1408_vm11 = vcmask 1041408  }
   0xc   :  { %3596 = vmatmul.mubr.msk.f32.vlgmr.msra.gmra.mxu1 %vm472_vm1, %v2856_v10  ;;  %3601 = vmatprep.subr.msk.mxu1 %vm485_vm0, %v457_v9  ;;  %v3217_v25 = vunpack.c.h.bf16 %v3287_v22  ;;  %v3216_v27 = vunpack.c.l.bf16 %v3287_v22  ;;  %v2873_v28 = vld [vmem:[%s6030_s0 + $0x40] sm:$0xff]  ;;  %v2874_v29 = vld [vmem:[%s6030_s0 + $0x48] sm:$0xff]  ;;  %v2875_v30 = vld [vmem:[%s6030_s0 + $0x50] sm:$0xff]  ;;  %vm1488_vm12 = vcmask 1046528   ;;  %vm1493_vm13 = vcmask 914432   ;;  %s4180_s13 = smov [#allocation2]  }
   0xd   :  { %3602 = vmatpush3.msk.msra.mxu1 %vm485_vm0, %v457_v9  ;;  %3598 = vmatprep.mubr.msk.f32.mxu1 %vm472_vm1, %v2857_v13  ;;  %v2876_v31 = vld [vmem:[%s6030_s0 + $0x58] sm:$0xf]  ;;  %v3278_v32 = vld [vmem:[%s6037_s7 + $0x30] sm:$0xff]   ;;  %v3277_v36 = vld [vmem:[%s6037_s7 + $0x28] sm:$0xff]   ;;  %s2752_s14 = sshll.u32 %s4180_s13, 4  ;;  %s2753_s14 = int_to_ptr.vmem [resolvable:$true] %s2752_s14 }
   0xe   :  { %3603 = vmatprep.subr.mxu1 %v456_v12  ;;  %v3177_v33 = vunpack.c.h.bf16 %v3278_v32  ;;  %v3176_v35 = vunpack.c.l.bf16 %v3278_v32  ;;  %v3173_v37 = vunpack.c.h.bf16 %v3277_v36  ;;  %v3172_v38 = vunpack.c.l.bf16 %v3277_v36  ;;  %v3276_v39 = vld [vmem:[%s6037_s7 + $0x20] sm:$0xff]   ;;  %v3275_v42 = vld [vmem:[%s6037_s7 + $0x18] sm:$0xff]   ;;  %v3274_v45 = vld [vmem:[%s6037_s7 + $0x10] sm:$0xff]   ;;  %p4160_p1 = scmp.lt.s32.totalorder %s2753_s14, %s2753_s14 }
   0xf   :  { %3604 = vmatpush3.msra.mxu1 %v456_v12  ;;  %v3169_v40 = vunpack.c.h.bf16 %v3276_v39  ;;  %v3168_v41 = vunpack.c.l.bf16 %v3276_v39  ;;  %v3165_v43 = vunpack.c.h.bf16 %v3275_v42  ;;  %v3164_v44 = vunpack.c.l.bf16 %v3275_v42  ;;  %v3273_v48 = vld [vmem:[%s6037_s7 + $0x8] sm:$0xff]   ;;  %v3151_v51 = vld [vmem:[%s6037_s7] sm:$0xff]  }
  0x10   :  { %3599 = vmatmul.mubr.msk.f32.gmra.mxu1 %vm472_vm1, %v2858_v15  ;;  %3605 = vmatprep.subr.mxu1 %v3209_v14  ;;  %v3161_v46 = vunpack.c.h.bf16 %v3274_v45  ;;  %v3160_v47 = vunpack.c.l.bf16 %v3274_v45  ;;  %v3157_v49 = vunpack.c.h.bf16 %v3273_v48  ;;  %v3156_v50 = vunpack.c.l.bf16 %v3273_v48  ;;  %v33_v1 = vld [vmem:[%s6038_s8] ss:$0 sm:$0xff] }
  0x11   :  { %3606 = vmatpush3.msra.mxu1 %v3209_v14  ;;  %3609 = vmatprep.mubr.msk.f32.mxu1 %vm472_vm1, %v446_v18  ;;  %v3153_v52 = vunpack.c.h.bf16 %v3151_v51  ;;  %v3152_v53 = vunpack.c.l.bf16 %v3151_v51 }
  0x12   :  { %3607 = vmatprep.subr.mxu1 %v3208_v17  ;;  %3661 = vmatpush3.msra.mxu0 %v3177_v33 }
  0x13   :  { %3608 = vmatpush3.msra.mxu1 %v3208_v17  ;;  %3662 = vmatprep.subr.mxu0 %v6129_v34 }
  0x14   :  { %3610 = vmatmul.mubr.msk.f32.vlgmr.msra.gmra.mxu1 %vm472_vm1, %v447_v21  ;;  %3615 = vmatprep.subr.msk.mxu1 %vm485_vm0, %v687_v20 }
  0x15   :  { %3616 = vmatpush3.msk.msra.mxu1 %vm485_vm0, %v687_v20  ;;  %3612 = vmatprep.mubr.msk.f32.mxu1 %vm472_vm1, %v448_v24 }
  0x16   :  { %3617 = vmatprep.subr.mxu1 %v686_v23  ;;  %3663 = vmatpush3.msra.mxu0 %v3176_v35 }
  0x17   :  { %3618 = vmatpush3.msra.mxu1 %v686_v23  ;;  %3664 = vmatprep.subr.mxu0 %v6129_v34 }
  0x18   :  { %3613 = vmatmul.mubr.msk.f32.gmra.mxu1 %vm472_vm1, %v449_v26  ;;  %3619 = vmatprep.subr.mxu1 %v3217_v25 }
  0x19   :  { %3620 = vmatpush3.msra.mxu1 %v3217_v25  ;;  %3623 = vmatprep.mubr.msk.f32.mxu1 %vm472_vm1, %v2873_v28 }
  0x1a   :  { %3621 = vmatprep.subr.mxu1 %v3216_v27  ;;  %3665 = vmatpush3.msra.mxu0 %v3173_v37 }
  0x1b   :  { %3622 = vmatpush3.msra.mxu1 %v3216_v27  ;;  %3666 = vmatprep.subr.mxu0 %v6129_v34 }
  0x1c   :  { %3624 = vmatmul.mubr.msk.f32.vlgmr.msra.gmra.mxu1 %vm472_vm1, %v2874_v29  ;;  %3629 = vmatprep.subr.mxu1 %v6129_v34 }
  0x1d   :  { %3626 = vmatprep.mubr.msk.f32.mxu1 %vm472_vm1, %v2875_v30  ;;  %3630 = vmatpush3.msra.mxu1 %v3177_v33 }
  0x1e   :  { %3631 = vmatprep.subr.mxu1 %v6129_v34  ;;  %3667 = vmatpush3.msra.mxu0 %v3172_v38 }
  0x1f   :  { %3632 = vmatpush3.msra.mxu1 %v3176_v35  ;;  %3668 = vmatprep.subr.mxu0 %v6129_v34 }
  0x20   :  { %3627 = vmatmul.mubr.msk.f32.gmra.mxu1 %vm472_vm1, %v2876_v31  ;;  %3633 = vmatprep.subr.mxu1 %v6129_v34  ;;  %vm1939_vm1 = vcmask 785408  }
  0x21   :  { %3634 = vmatpush3.msra.mxu1 %v3173_v37  ;;  %3669 = vmatpush3.msra.mxu0 %v3169_v40 }
  0x22   :  { %3635 = vmatprep.subr.mxu1 %v6129_v34  ;;  %3670 = vmatprep.subr.mxu0 %v6129_v34 }
  0x23   :  { %3636 = vmatpush3.msra.mxu1 %v3172_v38  ;;  %3671 = vmatpush3.msra.mxu0 %v3168_v41 }
  0x24   :  { %3637 = vmatprep.subr.mxu1 %v6129_v34  ;;  %3672 = vmatprep.subr.mxu0 %v6129_v34 }
  0x25   :  { %3638 = vmatpush3.msra.mxu1 %v3169_v40  ;;  %3673 = vmatpush3.msra.mxu0 %v3165_v43 }
  0x26   :  { %3639 = vmatprep.subr.mxu1 %v6129_v34  ;;  %3674 = vmatprep.subr.mxu0 %v6129_v34 }
  0x27   :  { %3640 = vmatpush3.msra.mxu1 %v3168_v41  ;;  %3675 = vmatpush3.msra.mxu0 %v3164_v44 }
  0x28   :  { %3641 = vmatprep.subr.mxu1 %v6129_v34  ;;  %3676 = vmatprep.subr.mxu0 %v6129_v34 }
  0x29   :  { %3642 = vmatpush3.msra.mxu1 %v3165_v43  ;;  %3677 = vmatpush3.msra.mxu0 %v3161_v46 }
  0x2a   :  { %3643 = vmatprep.subr.mxu1 %v6129_v34  ;;  %3678 = vmatprep.subr.mxu0 %v6129_v34 }
  0x2b   :  { %3644 = vmatpush3.msra.mxu1 %v3164_v44  ;;  %3679 = vmatpush3.msra.mxu0 %v3160_v47 }
  0x2c   :  { %3645 = vmatprep.subr.mxu1 %v6129_v34  ;;  %3680 = vmatprep.subr.mxu0 %v6129_v34 }
  0x2d   :  { %3646 = vmatpush3.msra.mxu1 %v3161_v46  ;;  %3681 = vmatpush3.msra.mxu0 %v3157_v49  ;;  %v4402_v46 = vld [vmem:[%s6033_s3 + $0x68] sm:$0xff]  }
  0x2e   :  { %3647 = vmatprep.subr.mxu1 %v6129_v34  ;;  %3682 = vmatprep.subr.mxu0 %v6129_v34  ;;  %v2973_v48 = vunpack.c.h.bf16 %v4402_v46 }
  0x2f   :  { %3648 = vmatpush3.msra.mxu1 %v3160_v47  ;;  %3683 = vmatpush3.msra.mxu0 %v3156_v50  ;;  %v4407_v47 = vld [vmem:[%s6033_s3 + $0x30] sm:$0xff]  }
  0x30   :  { %3649 = vmatprep.subr.mxu1 %v6129_v34  ;;  %3684 = vmatprep.subr.mxu0 %v6129_v34  ;;  %v2944_v51 = vunpack.c.l.bf16 %v4407_v47 }
  0x31   :  { %3650 = vmatpush3.msra.mxu1 %v3157_v49  ;;  %3685 = vmatpush3.msra.mxu0 %v3153_v52  ;;  %v2945_v49 = vunpack.c.h.bf16 %v4407_v47 }
  0x32   :  { %3651 = vmatprep.subr.mxu1 %v6129_v34  ;;  %3686 = vmatprep.subr.mxu0 %v6129_v34 }
  0x33   :  { %3652 = vmatpush3.msra.mxu1 %v3156_v50  ;;  %3657 = vmatprep.mubr.msk.f32.mxu1 %vm4178_vm2, %v6129_v34  ;;  %v2972_v50 = vunpack.c.l.bf16 %v4402_v46 }
  0x34   :  { %3653 = vmatprep.subr.mxu1 %v6129_v34  ;;  %3687 = vmatpush3.msra.mxu0 %v3152_v53 }
  0x35   :  { %3654 = vmatpush3.msra.mxu1 %v3153_v52  ;;  %3722 = vmatprep.subr.mxu0 %v6129_v34  ;;  %v4416_v52 = vld [vmem:[%s6033_s3 + $0x60] sm:$0xff]  }
  0x36   :  { %3655 = vmatprep.subr.mxu1 %v6129_v34 }
  0x37   :  { %3656 = vmatpush3.msra.mxu1 %v3152_v53  ;;  %v4421_v53 = vld [vmem:[%s6033_s3 + $0x28] sm:$0xff]  }
  0x38   :  { %3691 = vmatprep.subr.mxu1 %v6129_v34 }
  0xcc   :  { %v3597_v54 = vpop.f32.mrf.mxu1 }
  0xce   :  { %v555_v55 = vpop.f32.mrf.mxu1 }
  0xd0   :  { %v3600_v56 = vpop.f32.mrf.mxu1 }
  0xd2   :  { %v565_v57 = vpop.f32.mrf.mxu1 }
  0xd4   :  { %v3611_v58 = vpop.f32.mrf.mxu1 }
  0xd5   :  { %v661_v62 = vadd.f32 %v3611_v58, %v3597_v54  ;;  %v2969_v54 = vunpack.c.h.bf16 %v4416_v52  ;;  %v2968_v58 = vunpack.c.l.bf16 %v4416_v52 }
  0xd6   :  { %v655_v59 = vpop.f32.mrf.mxu1 }
  0xd7   :  { %v656_v0 = vadd.f32 %v655_v59, %v555_v55  ;;  %v2941_v55 = vunpack.c.h.bf16 %v4421_v53  ;;  %v2940_v59 = vunpack.c.l.bf16 %v4421_v53 }
  0xd8   :  { %v3614_v60 = vpop.f32.mrf.mxu1 }
  0xd9   :  { %v671_v4 = vadd.f32 %v3614_v60, %v3600_v56  ;;  %v4434_v56 = vld [vmem:[%s6033_s3 + $0x58] sm:$0xff]  }
  0xda   :  { %v665_v61 = vpop.f32.mrf.mxu1  ;;  %v2965_v60 = vunpack.c.h.bf16 %v4434_v56 }
  0xdb   :  { %v666_v10 = vadd.f32 %v665_v61, %v565_v57  ;;  %v4439_v57 = vld [vmem:[%s6033_s3 + $0x20] sm:$0xff]  }
  0xdc   :  { %v3625_v63 = vpop.f32.mrf.mxu1  ;;  %v2937_v61 = vunpack.c.h.bf16 %v4439_v57 }
  0xdd   :  { %v789_v2 = vadd.f32 %v3625_v63, %v661_v62  ;;  %v4460_v62 = vld [vmem:[%s6033_s3 + $0x50] sm:$0xff]   ;;  %v4465_v63 = vld [vmem:[%s6033_s3 + $0x18] sm:$0xff]  }
  0xde   :  { %v769_v3 = vpop.f32.mrf.mxu1 }
  0xdf   :  { %v788_v5 = vadd.f32 %v769_v3, %v656_v0  ;;  %v4367_v6 = vadd.f32 %v789_v2, %v33_v1  ;;  %v2964_v0 = vunpack.c.l.bf16 %v4434_v56  ;;  %v2961_v2 = vunpack.c.h.bf16 %v4460_v62 }
  0xe0   :  { %v3628_v7 = vpop.f32.mrf.mxu1  ;;  %v2933_v3 = vunpack.c.h.bf16 %v4465_v63 }
  0xe1   :  { %v4369_v8 = vadd.f32 %v788_v5, %v33_v1  ;;  %v791_v9 = vadd.f32 %v3628_v7, %v671_v4  ;;  %v812_v13 = vmul.f32 %v4367_v6, %v4367_v6  ;;  %v798_v17 = vsel %vm796_vm3, %v4367_v6, 0.0  ;;  %v4486_v4 = vld [vmem:[%s6033_s3 + $0x48] sm:$0xff]   ;;  %v4491_v5 = vld [vmem:[%s6033_s3 + $0x10] sm:$0xff]  }
  0xe2   :  { %v779_v11 = vpop.f32.mrf.mxu1  ;;  %v2960_v7 = vunpack.c.l.bf16 %v4460_v62 }
  0xe3   :  { %v811_v12 = vmul.f32 %v4369_v8, %v4369_v8  ;;  %v797_v14 = vsel %vm796_vm3, %v4369_v8, 0.0  ;;  %v4377_v15 = vadd.f32 %v791_v9, %v33_v1  ;;  %v790_v16 = vadd.f32 %v779_v11, %v666_v10 }
  0xe4   :  { %v799_v20 = vadd.f32 %v798_v17, %v797_v14  ;;  %v816_v21 = vsel %vm796_vm3, %v812_v13, 0.0  ;;  %v2932_v9 = vunpack.c.l.bf16 %v4465_v63  ;;  %v2957_v10 = vunpack.c.h.bf16 %v4486_v4  ;;  %v4517_v13 = vld [vmem:[%s6033_s3 + $0x8] sm:$0xff]  }
  0xe5   :  { %v815_v18 = vsel %vm796_vm3, %v811_v12, 0.0  ;;  %v4382_v19 = vadd.f32 %v790_v16, %v33_v1  ;;  %v814_v22 = vmul.f32 %v4377_v15, %v4377_v15  ;;  %v803_v27 = vsel %vm802_vm4, %v4377_v15, 0.0  ;;  %v4512_v12 = vld [vmem:[%s6033_s3 + $0x40] sm:$0xff]  }
  0xe6   :  { %v817_v25 = vadd.f32 %v816_v21, %v815_v18  ;;  %v2936_v1 = vunpack.c.l.bf16 %v4439_v57  ;;  %v2929_v11 = vunpack.c.h.bf16 %v4491_v5  ;;  %v2956_v14 = vunpack.c.l.bf16 %v4486_v4  ;;  %v4543_v21 = vld [vmem:[%s6033_s3] sm:$0xff]  }
  0xe7   :  { %v800_v23 = vsel %vm796_vm3, %v4382_v19, 0.0  ;;  %v813_v24 = vmul.f32 %v4382_v19, %v4382_v19  ;;  %v820_v31 = vsel %vm802_vm4, %v814_v22, 0.0  ;;  %v2928_v16 = vunpack.c.l.bf16 %v4491_v5 }
  0xe8   :  { %v801_v26 = vadd.f32 %v800_v23, %v799_v20  ;;  %v2953_v17 = vunpack.c.h.bf16 %v4512_v12  ;;  %v2925_v18 = vunpack.c.h.bf16 %v4517_v13  ;;  %v4538_v20 = vld [vmem:[%s6033_s3 + $0x38] sm:$0xff]   ;;  %v2952_v22 = vunpack.c.l.bf16 %v4512_v12 }
  0xe9   :  { %v818_v28 = vsel %vm796_vm3, %v813_v24, 0.0  ;;  %v2924_v23 = vunpack.c.l.bf16 %v4517_v13  ;;  %v2949_v24 = vunpack.c.h.bf16 %v4538_v20 }
  0xea   :  { %v804_v29 = vadd.f32 %v803_v27, %v801_v26  ;;  %v819_v30 = vadd.f32 %v818_v28, %v817_v25  ;;  %v2921_v25 = vunpack.c.h.bf16 %v4543_v21  ;;  %v2948_v26 = vunpack.c.l.bf16 %v4538_v20 }
  0xeb   :  { %v2920_v27 = vunpack.c.l.bf16 %v4543_v21  ;;  %v3281_v21 = vld [vmem:[%s6037_s7 + $0x48] sm:$0xff]  }
  0xec   :  { %v805_v32 = vrot.slane %v804_v29, 4  ;;  %v821_v33 = vadd.f32 %v820_v31, %v819_v30 }
  0xee   :  { %v806_v35 = vadd.f32 %v805_v32, %v804_v29  ;;  %v822_v36 = vrot.slane %v821_v33, 4 }
  0xf0   :  { %v807_v37 = vrot.slane %v806_v35, 2  ;;  %v823_v38 = vadd.f32 %v822_v36, %v821_v33 }
  0xf2   :  { %v808_v39 = vadd.f32 %v807_v37, %v806_v35  ;;  %v824_v40 = vrot.slane %v823_v38, 2 }
  0xf4   :  { %v809_v41 = vrot.slane %v808_v39, 1  ;;  %v825_v42 = vadd.f32 %v824_v40, %v823_v38  ;;  %v983_v38 = vlaneseq  ;;  %v34_v40 = vld [vmem:[%s6038_s8 + $0x1] ss:$0 sm:$0xff] }
  0xf6   :  { %v810_v43 = vadd.f32 %v809_v41, %v808_v39  ;;  %v826_v44 = vrot.slane %v825_v42, 1  ;;  %v4581_v39 = vshrl.u32 %v983_v38, 7 }
  0xf8   :  { %3658 = vmatmul.mubr.msk.f32.vlgmr.msra.gmra.mxu1 %vm796_vm3, %v810_v43  ;;  %v827_v45 = vadd.f32 %v826_v44, %v825_v42  ;;  %6149 = vst [vmem:[#allocation5_spill] sm:$0xff] %v4581_v39  ;;  %v4587_v41 = vsub.s32 0, %v4581_v39  ;;  %v35_v44 = vld [vmem:[%s6038_s8 + $0x2] ss:$0 sm:$0xff] }
  0xf9   :  { %3719 = vmatprep.mubr.msk.f32.mxu1 %vm4178_vm2, %v6129_v34  ;;  %3692 = vmatpush3.msra.mxu1 %v2973_v48 }
  0xfa   :  { %3689 = vmatmul.mubr.msk.f32.vlgmr.msra.gmra.mxu0 %vm796_vm3, %v827_v45  ;;  %3693 = vmatprep.subr.mxu1 %v6129_v34  ;;  %6150 = vst [vmem:[#allocation6_spill] sm:$0xff] %v4587_v41 }
  0xfb   :  { %3750 = vmatprep.mubr.msk.f32.mxu0 %vm4178_vm2, %v6129_v34  ;;  %3723 = vmatpush3.msra.mxu0 %v2945_v49 }
  0xfc   :  { %3724 = vmatprep.subr.mxu0 %v6129_v34  ;;  %3694 = vmatpush3.msra.mxu1 %v2972_v50 }
  0xfd   :  { %3725 = vmatpush3.msra.mxu0 %v2944_v51  ;;  %3695 = vmatprep.subr.mxu1 %v6129_v34 }
  0xfe   :  { %3726 = vmatprep.subr.mxu0 %v6129_v34  ;;  %3696 = vmatpush3.msra.mxu1 %v2969_v54 }
  0xff   :  { %3727 = vmatpush3.msra.mxu0 %v2941_v55  ;;  %3697 = vmatprep.subr.mxu1 %v6129_v34 }
 0x100   :  { %3728 = vmatprep.subr.mxu0 %v6129_v34  ;;  %3698 = vmatpush3.msra.mxu1 %v2968_v58 }
 0x101   :  { %3729 = vmatpush3.msra.mxu0 %v2940_v59  ;;  %3699 = vmatprep.subr.mxu1 %v6129_v34 }
 0x102   :  { %3730 = vmatprep.subr.mxu0 %v6129_v34  ;;  %3700 = vmatpush3.msra.mxu1 %v2965_v60 }
 0x103   :  { %3731 = vmatpush3.msra.mxu0 %v2937_v61  ;;  %3701 = vmatprep.subr.mxu1 %v6129_v34 }
 0x104   :  { %3732 = vmatprep.subr.mxu0 %v6129_v34  ;;  %3702 = vmatpush3.msra.mxu1 %v2964_v0 }
 0x105   :  { %3733 = vmatpush3.msra.mxu0 %v2936_v1  ;;  %3703 = vmatprep.subr.mxu1 %v6129_v34 }
 0x106   :  { %3734 = vmatprep.subr.mxu0 %v6129_v34  ;;  %3704 = vmatpush3.msra.mxu1 %v2961_v2 }
 0x107   :  { %3735 = vmatpush3.msra.mxu0 %v2933_v3  ;;  %3705 = vmatprep.subr.mxu1 %v6129_v34 }
 0x108   :  { %3736 = vmatprep.subr.mxu0 %v6129_v34  ;;  %3706 = vmatpush3.msra.mxu1 %v2960_v7 }
 0x109   :  { %3737 = vmatpush3.msra.mxu0 %v2932_v9  ;;  %3707 = vmatprep.subr.mxu1 %v6129_v34 }
 0x10a   :  { %3738 = vmatprep.subr.mxu0 %v6129_v34  ;;  %3708 = vmatpush3.msra.mxu1 %v2957_v10 }
 0x10b   :  { %3739 = vmatpush3.msra.mxu0 %v2929_v11  ;;  %3709 = vmatprep.subr.mxu1 %v6129_v34 }
 0x10c   :  { %3740 = vmatprep.subr.mxu0 %v6129_v34  ;;  %3710 = vmatpush3.msra.mxu1 %v2956_v14 }
 0x10d   :  { %3741 = vmatpush3.msra.mxu0 %v2928_v16  ;;  %3711 = vmatprep.subr.mxu1 %v6129_v34 }
 0x10e   :  { %3742 = vmatprep.subr.mxu0 %v6129_v34  ;;  %3712 = vmatpush3.msra.mxu1 %v2953_v17 }
 0x10f   :  { %3743 = vmatpush3.msra.mxu0 %v2925_v18  ;;  %3713 = vmatprep.subr.mxu1 %v6129_v34 }
 0x110   :  { %3744 = vmatprep.subr.mxu0 %v6129_v34  ;;  %3714 = vmatpush3.msra.mxu1 %v2952_v22 }
 0x111   :  { %3745 = vmatpush3.msra.mxu0 %v2924_v23  ;;  %3715 = vmatprep.subr.mxu1 %v6129_v34 }
 0x112   :  { %3746 = vmatprep.subr.mxu0 %v6129_v34  ;;  %3716 = vmatpush3.msra.mxu1 %v2949_v24 }
 0x113   :  { %3747 = vmatpush3.msra.mxu0 %v2921_v25  ;;  %3717 = vmatprep.subr.mxu1 %v6129_v34 }
 0x114   :  { %3748 = vmatprep.subr.mxu0 %v6129_v34  ;;  %3718 = vmatpush3.msra.mxu1 %v2948_v26 }
 0x115   :  { %3749 = vmatpush3.msra.mxu0 %v2920_v27  ;;  %3753 = vmatprep.subr.mxu1 %v6129_v34 }
 0x116   :  { %3784 = vmatprep.subr.mxu0 %v6129_v34 }
 0x1b8   :  { %v897_v28 = vpop.f32.mrf.mxu1 }
 0x1b9   :  { %v901_v29 = vmul.f32 0.0025510204, %v897_v28 }
 0x1ba   :  { %v3659_v30 = vpop.f32.mrf.mxu1  ;;  %v971_v31 = vpop.f32.mrf.mxu0 }
 0x1bb   :  { %v976_v32 = vmul.f32 %v901_v29, %v901_v29  ;;  %v975_v33 = vmul.f32 0.0025510204, %v971_v31 }
 0x1bc   :  { %v3690_v35 = vpop.f32.mrf.mxu0 }
 0x1bd   :  { %v977_v36 = vsub.f32 %v975_v33, %v976_v32 }
 0x1bf   :  { %v978_v37 = vadd.f32 1e-05, %v977_v36 }
 0x1c1   :  { %4129 = vrsqrt.f32 %v978_v37 }
 0x1ce   :  { %v4130_v42 = vpop.eup %4129 }
 0x1cf   :  { %v980_v43 = vmul.f32 %v4130_v42, %v34_v40 }
 0x1d1   :  { %v981_v45 = vmul.f32 %v980_v43, %v901_v29  ;;  %v986_v28 = vrot.slane %v980_v43, %v4587_v41 }
 0x1d3   :  { %v982_v30 = vsub.f32 %v35_v44, %v981_v45  ;;  %v987_v32 = vmul.f32 %v986_v28, %v4369_v8  ;;  %v988_v33 = vmul.f32 %v986_v28, %v4367_v6  ;;  %v989_v40 = vmul.f32 %v986_v28, %v4382_v19 }
 0x1d4   :  { %v990_v42 = vmul.f32 %v986_v28, %v4377_v15 }
 0x1d5   :  { %v994_v31 = vrot.slane %v982_v30, %v4587_v41 }
 0x1d7   :  { %v995_v35 = vadd.f32 %v994_v31, %v987_v32  ;;  %v996_v36 = vadd.f32 %v994_v31, %v988_v33  ;;  %v4598_v29 = vadd.f32 %v994_v31, %v989_v40  ;;  %v4600_v43 = vadd.f32 %v994_v31, %v990_v42  ;;  %v4609_v31 = vld [vmem:[%s6033_s3 + $0xa0] sm:$0xff]  }
 0x1d9   :  { %v1003_v37 = vmul.f32 1.442695, %v995_v35  ;;  %v1005_v38 = vmul.f32 1.442695, %v996_v36  ;;  %v1007_v45 = vmul.f32 1.442695, %v4598_v29 }
 0x1da   :  { %v1009_v6 = vmul.f32 1.442695, %v4600_v43  ;;  %vm999_vm5 = vcmp.gt.f32.partialorder %v995_v35, 0.0  ;;  %vm1000_vm6 = vcmp.gt.f32.partialorder %v996_v36, 0.0  ;;  %vm1001_vm8 = vcmp.gt.f32.partialorder %v4598_v29, 0.0 }
 0x1db   :  { %4131 = vpow2.f32 %v1003_v37  ;;  %vm1002_vm9 = vcmp.gt.f32.partialorder %v4600_v43, 0.0 }
 0x1dc   :  { %4133 = vpow2.f32 %v1005_v38 }
 0x1dd   :  { %4135 = vpow2.f32 %v1007_v45 }
 0x1de   :  { %4137 = vpow2.f32 %v1009_v6  ;;  %v4638_v6 = vld [vmem:[%s6033_s3 + $0x90] sm:$0xff]  }
 0x1df   :  { %v2993_v46 = vunpack.c.h.bf16 %v4638_v6 }
 0x1e8   :  { %v4132_v44 = vpop.eup %4131 }
 0x1e9   :  { %v4134_v8 = vpop.eup %4133  ;;  %v2888_v30 = vadd.f32 -1.0, %v4132_v44  ;;  %v3001_v44 = vunpack.c.h.bf16 %v4609_v31 }
 0x1ea   :  { %v2889_v32 = vadd.f32 -1.0, %v4134_v8  ;;  %v3000_v8 = vunpack.c.l.bf16 %v4609_v31 }
 0x1eb   :  { %v1015_v33 = vmul.f32 1.6732632, %v2888_v30 }
 0x1ec   :  { %v1016_v37 = vmul.f32 1.6732632, %v2889_v32  ;;  %v4136_v32 = vpop.eup %4135 }
 0x1ed   :  { %v1019_v19 = vsel %vm999_vm5, %v995_v35, %v1015_v33  ;;  %v4657_v33 = vld [vmem:[%s6033_s3 + $0x88] sm:$0xff]   ;;  %vm2744_vm5 = vcmask 58368  }
 0x1ee   :  { %v1020_v15 = vsel %vm1000_vm6, %v996_v36, %v1016_v37  ;;  %v4604_v28 = vmul.f32 1.050701, %v1019_v19  ;;  %v4620_v36 = vld [vmem:[%s6033_s3 + $0x98] sm:$0xff]   ;;  %v2989_v52 = vunpack.c.h.bf16 %v4657_v33  ;;  %v4676_v19 = vld [vmem:[%s6033_s3 + $0x80] sm:$0xff]  }
 0x1ef   :  { %v4611_v38 = vmul.f32 1.050701, %v1020_v15  ;;  %v2997_v30 = vunpack.c.h.bf16 %v4620_v36  ;;  %v2985_v56 = vunpack.c.h.bf16 %v4676_v19 }
 0x1f0   :  { %v1028_v40 = vrot.slane %v4604_v28, 7 }
 0x1f1   :  { %v1033_v42 = vrot.slane %v4611_v38, 7  ;;  %v1255_v47 = vrot.slane %v4611_v38, 5 }
 0x1f2   :  { %v1031_v35 = vsel %vm1030_vm7, 0.0, %v1028_v40 }
 0x1f3   :  { %v1034_v45 = vsel %vm1030_vm7, %v1028_v40, %v1033_v42  ;;  %3751 = vmatmul.mubr.msk.f32.vlgmr.msra.gmra.mxu0 %vm796_vm3, %v1031_v35  ;;  %v4695_v40 = vld [vmem:[%s6033_s3 + $0x78] sm:$0xff]  }
 0x1f4   :  { %3720 = vmatmul.mubr.msk.f32.vlgmr.msra.gmra.mxu1 %vm796_vm3, %v1034_v45  ;;  %3785 = vmatpush3.msra.mxu0 %v2973_v48  ;;  %v2996_v48 = vunpack.c.l.bf16 %v4620_v36  ;;  %v2981_v62 = vunpack.c.h.bf16 %v4695_v40  ;;  %v2980_v35 = vunpack.c.l.bf16 %v4695_v40 }
 0x1f5   :  { %3754 = vmatpush3.msra.mxu1 %v3001_v44  ;;  %3786 = vmatprep.subr.mxu0 %v6129_v34 }
 0x1f6   :  { %3755 = vmatprep.subr.mxu1 %v6129_v34  ;;  %3787 = vmatpush3.msra.mxu0 %v2972_v50  ;;  %v4138_v50 = vpop.eup %4137 }
 0x1f7   :  { %3756 = vmatpush3.msra.mxu1 %v3000_v8  ;;  %3788 = vmatprep.subr.mxu0 %v6129_v34  ;;  %v2891_v37 = vadd.f32 -1.0, %v4138_v50 }
 0x1f8   :  { %3757 = vmatprep.subr.mxu1 %v6129_v34  ;;  %3789 = vmatpush3.msra.mxu0 %v2969_v54  ;;  %v2992_v54 = vunpack.c.l.bf16 %v4638_v6 }
 0x1f9   :  { %3758 = vmatpush3.msra.mxu1 %v2997_v30  ;;  %3790 = vmatprep.subr.mxu0 %v6129_v34  ;;  %v1018_v15 = vmul.f32 1.6732632, %v2891_v37 }
 0x1fa   :  { %3759 = vmatprep.subr.mxu1 %v6129_v34  ;;  %3791 = vmatpush3.msra.mxu0 %v2968_v58  ;;  %v2890_v58 = vadd.f32 -1.0, %v4136_v32 }
 0x1fb   :  { %3760 = vmatpush3.msra.mxu1 %v2996_v48  ;;  %3792 = vmatprep.subr.mxu0 %v6129_v34  ;;  %v1022_v42 = vsel %vm1002_vm9, %v4600_v43, %v1018_v15 }
 0x1fc   :  { %3761 = vmatprep.subr.mxu1 %v6129_v34  ;;  %3793 = vmatpush3.msra.mxu0 %v2965_v60  ;;  %v2988_v60 = vunpack.c.l.bf16 %v4657_v33  ;;  %v1026_v4 = vmul.f32 1.050701, %v1022_v42 }
 0x1fd   :  { %3762 = vmatpush3.msra.mxu1 %v2993_v46  ;;  %3794 = vmatprep.subr.mxu0 %v6129_v34 }
 0x1fe   :  { %3763 = vmatprep.subr.mxu1 %v6129_v34  ;;  %3795 = vmatpush3.msra.mxu0 %v2964_v0  ;;  %v1017_v0 = vmul.f32 1.6732632, %v2890_v58  ;;  %v1261_v45 = vrot.slane %v1026_v4, 5 }
 0x1ff   :  { %3764 = vmatpush3.msra.mxu1 %v2992_v54  ;;  %3796 = vmatprep.subr.mxu0 %v6129_v34 }
 0x200   :  { %3765 = vmatprep.subr.mxu1 %v6129_v34  ;;  %3797 = vmatpush3.msra.mxu0 %v2961_v2  ;;  %v2984_v2 = vunpack.c.l.bf16 %v4676_v19  ;;  %v36_v19 = vld [vmem:[%s6038_s8 + $0x3] ss:$0 sm:$0xff] }
 0x201   :  { %3766 = vmatpush3.msra.mxu1 %v2989_v52  ;;  %3798 = vmatprep.subr.mxu0 %v6129_v34 }
 0x202   :  { %3767 = vmatprep.subr.mxu1 %v6129_v34  ;;  %3799 = vmatpush3.msra.mxu0 %v2960_v7  ;;  %v1021_v7 = vsel %vm1001_vm8, %v4598_v29, %v1017_v0 }
 0x203   :  { %3768 = vmatpush3.msra.mxu1 %v2988_v60  ;;  %3800 = vmatprep.subr.mxu0 %v6129_v34  ;;  %v4727_v29 = vmul.f32 1.050701, %v1021_v7 }
 0x204   :  { %3769 = vmatprep.subr.mxu1 %v6129_v34  ;;  %3801 = vmatpush3.msra.mxu0 %v2957_v10  ;;  %v4718_v10 = vld [vmem:[%s6033_s3 + $0x70] sm:$0xff]  }
 0x205   :  { %3770 = vmatpush3.msra.mxu1 %v2985_v56  ;;  %3802 = vmatprep.subr.mxu0 %v6129_v34  ;;  %v1256_v43 = vrot.slane %v4727_v29, 5  ;;  %v1410_v53 = vrot.slane %v4727_v29, 6 }
 0x206   :  { %3771 = vmatprep.subr.mxu1 %v6129_v34  ;;  %3803 = vmatpush3.msra.mxu0 %v2956_v14  ;;  %v2977_v14 = vunpack.c.h.bf16 %v4718_v10 }
 0x207   :  { %3772 = vmatpush3.msra.mxu1 %v2984_v2  ;;  %3804 = vmatprep.subr.mxu0 %v6129_v34  ;;  %v1262_v12 = vsel %vm1254_vm10, %v1256_v43, %v1261_v45 }
 0x208   :  { %3773 = vmatprep.subr.mxu1 %v6129_v34  ;;  %3805 = vmatpush3.msra.mxu0 %v2953_v17  ;;  %v2976_v17 = vunpack.c.l.bf16 %v4718_v10 }
 0x209   :  { %3774 = vmatpush3.msra.mxu1 %v2981_v62  ;;  %3806 = vmatprep.subr.mxu0 %v6129_v34 }
 0x20a   :  { %3775 = vmatprep.subr.mxu1 %v6129_v34  ;;  %3807 = vmatpush3.msra.mxu0 %v2952_v22  ;;  %v3189_v22 = vunpack.c.h.bf16 %v3281_v21 }
 0x20b   :  { %3776 = vmatpush3.msra.mxu1 %v2980_v35  ;;  %3808 = vmatprep.subr.mxu0 %v6129_v34 }
 0x20c   :  { %3777 = vmatprep.subr.mxu1 %v6129_v34  ;;  %3809 = vmatpush3.msra.mxu0 %v2949_v24  ;;  %v3280_v24 = vld [vmem:[%s6037_s7 + $0x40] sm:$0xff]  }
 0x20d   :  { %3778 = vmatpush3.msra.mxu1 %v2977_v14  ;;  %3810 = vmatprep.subr.mxu0 %v6129_v34 }
 0x20e   :  { %3779 = vmatprep.subr.mxu1 %v6129_v34  ;;  %3781 = vmatprep.mubr.msk.f32.mxu1 %vm4178_vm2, %v6129_v34 }
 0x20f   :  { %3780 = vmatpush3.msra.mxu1 %v2976_v17  ;;  %3811 = vmatpush3.msra.mxu0 %v2948_v26  ;;  %v3184_v26 = vunpack.c.l.bf16 %v3280_v24 }
 0x210   :  { %3812 = vmatprep.mubr.msk.f32.mxu0 %vm4178_vm2, %v6129_v34  ;;  %3782 = vmatmul.mubr.msk.f32.vlgmr.msra.gmra.mxu1 %vm796_vm3, %v4604_v28 }
 0x211   :  { %3813 = vmatmul.mubr.msk.f32.vlgmr.msra.gmra.mxu0 %vm796_vm3, %v1262_v12  ;;  %3815 = vmatprep.subr.mxu1 %v6129_v34 }
 0x212   :  { %3846 = vmatprep.subr.mxu0 %v6129_v34  ;;  %3816 = vmatpush3.msra.mxu1 %v2945_v49  ;;  %v1257_v49 = vsel %vm1254_vm10, %v1255_v47, %v1256_v43 }
 0x213   :  { %3847 = vmatpush3.msra.mxu0 %v3001_v44  ;;  %3817 = vmatprep.subr.mxu1 %v6129_v34 }
 0x214   :  { %3848 = vmatprep.subr.mxu0 %v6129_v34  ;;  %3818 = vmatpush3.msra.mxu1 %v2944_v51  ;;  %v1409_v51 = vrot.slane %v4611_v38, 6 }
 0x215   :  { %3849 = vmatpush3.msra.mxu0 %v3000_v8  ;;  %3819 = vmatprep.subr.mxu1 %v6129_v34 }
 0x216   :  { %3850 = vmatprep.subr.mxu0 %v6129_v34  ;;  %3820 = vmatpush3.msra.mxu1 %v2941_v55  ;;  %v1259_v55 = vsel %vm1030_vm7, 0.0, %v1257_v49  ;;  %v1411_v57 = vsel %vm1408_vm11, %v1409_v51, %v1410_v53 }
 0x217   :  { %3851 = vmatpush3.msra.mxu0 %v2997_v30  ;;  %3821 = vmatprep.subr.mxu1 %v6129_v34 }
 0x218   :  { %3852 = vmatprep.subr.mxu0 %v6129_v34  ;;  %3822 = vmatpush3.msra.mxu1 %v2940_v59  ;;  %v3285_v59 = vld [vmem:[%s6037_s7 + $0x68] sm:$0xff]  }
 0x219   :  { %3853 = vmatpush3.msra.mxu0 %v2996_v48  ;;  %3823 = vmatprep.subr.mxu1 %v6129_v34  ;;  %v3204_v63 = vunpack.c.l.bf16 %v3285_v59 }
 0x21a   :  { %3854 = vmatprep.subr.mxu0 %v6129_v34  ;;  %3824 = vmatpush3.msra.mxu1 %v2937_v61  ;;  %v3205_v61 = vunpack.c.h.bf16 %v3285_v59 }
 0x21b   :  { %3855 = vmatpush3.msra.mxu0 %v2993_v46  ;;  %3825 = vmatprep.subr.mxu1 %v6129_v34 }
 0x21c   :  { %3856 = vmatprep.subr.mxu0 %v6129_v34  ;;  %3826 = vmatpush3.msra.mxu1 %v2936_v1  ;;  %v3284_v1 = vld [vmem:[%s6037_s7 + $0x60] sm:$0xff]  }
 0x21d   :  { %3857 = vmatpush3.msra.mxu0 %v2992_v54  ;;  %3827 = vmatprep.subr.mxu1 %v6129_v34  ;;  %v3200_v5 = vunpack.c.l.bf16 %v3284_v1 }
 0x21e   :  { %3858 = vmatprep.subr.mxu0 %v6129_v34  ;;  %3828 = vmatpush3.msra.mxu1 %v2933_v3  ;;  %v3201_v3 = vunpack.c.h.bf16 %v3284_v1  ;;  %v4945_v1 = vld [vmem:[%s6034_s4 + $0x30] sm:$0xff]  }
 0x21f   :  { %3859 = vmatpush3.msra.mxu0 %v2989_v52  ;;  %3829 = vmatprep.subr.mxu1 %v6129_v34 }
 0x220   :  { %3860 = vmatprep.subr.mxu0 %v6129_v34  ;;  %3830 = vmatpush3.msra.mxu1 %v2932_v9  ;;  %v3283_v9 = vld [vmem:[%s6037_s7 + $0x58] sm:$0xff]  }
 0x221   :  { %3861 = vmatpush3.msra.mxu0 %v2988_v60  ;;  %3831 = vmatprep.subr.mxu1 %v6129_v34  ;;  %v3196_v13 = vunpack.c.l.bf16 %v3283_v9 }
 0x222   :  { %3862 = vmatprep.subr.mxu0 %v6129_v34  ;;  %3832 = vmatpush3.msra.mxu1 %v2929_v11  ;;  %v3197_v11 = vunpack.c.h.bf16 %v3283_v9  ;;  %v6088_v9 = vunpack.c.l.bf16 %v4945_v1 }
 0x223   :  { %3863 = vmatpush3.msra.mxu0 %v2985_v56  ;;  %3833 = vmatprep.subr.mxu1 %v6129_v34 }
 0x224   :  { %3864 = vmatprep.subr.mxu0 %v6129_v34  ;;  %3834 = vmatpush3.msra.mxu1 %v2928_v16  ;;  %v3282_v16 = vld [vmem:[%s6037_s7 + $0x50] sm:$0xff]  }
 0x225   :  { %3865 = vmatpush3.msra.mxu0 %v2984_v2  ;;  %3835 = vmatprep.subr.mxu1 %v6129_v34  ;;  %v3192_v20 = vunpack.c.l.bf16 %v3282_v16 }
 0x226   :  { %3866 = vmatprep.subr.mxu0 %v6129_v34  ;;  %3836 = vmatpush3.msra.mxu1 %v2925_v18  ;;  %v3193_v18 = vunpack.c.h.bf16 %v3282_v16  ;;  %v4967_v16 = vld [vmem:[%s6034_s4 + $0x28] sm:$0xff]  }
 0x227   :  { %3867 = vmatpush3.msra.mxu0 %v2981_v62  ;;  %3837 = vmatprep.subr.mxu1 %v6129_v34 }
 0x228   :  { %3868 = vmatprep.subr.mxu0 %v6129_v34  ;;  %3838 = vmatpush3.msra.mxu1 %v2924_v23  ;;  %v3188_v23 = vunpack.c.l.bf16 %v3281_v21  ;;  %v6076_v21 = vunpack.c.l.bf16 %v4967_v16 }
 0x229   :  { %3869 = vmatpush3.msra.mxu0 %v2980_v35  ;;  %3839 = vmatprep.subr.mxu1 %v6129_v34 }
 0x22a   :  { %3870 = vmatprep.subr.mxu0 %v6129_v34  ;;  %3840 = vmatpush3.msra.mxu1 %v2921_v25  ;;  %v3185_v25 = vunpack.c.h.bf16 %v3280_v24  ;;  %v4993_v24 = vld [vmem:[%s6034_s4 + $0x20] sm:$0xff]  }
 0x22b   :  { %3871 = vmatpush3.msra.mxu0 %v2977_v14  ;;  %3841 = vmatprep.subr.mxu1 %v6129_v34 }
 0x22c   :  { %3872 = vmatprep.subr.mxu0 %v6129_v34  ;;  %3842 = vmatpush3.msra.mxu1 %v2920_v27  ;;  %v3279_v27 = vld [vmem:[%s6037_s7 + $0x38] sm:$0xff]   ;;  %s4179_s7 = smov 120  }
 0x22d   :  { %3843 = vmatprep.mubr.msk.f32.mxu1 %vm4178_vm2, %v6129_v34  ;;  %3873 = vmatpush3.msra.mxu0 %v2976_v17  ;;  %v3181_v28 = vunpack.c.h.bf16 %v3279_v27  ;;  %v3180_v31 = vunpack.c.l.bf16 %v3279_v27  ;;  %v6064_v27 = vunpack.c.l.bf16 %v4993_v24 }
 0x22e   :  { %3874 = vmatprep.mubr.msk.f32.mxu0 %vm4178_vm2, %v6129_v34  ;;  %3844 = vmatmul.mubr.msk.f32.vlgmr.msra.gmra.mxu1 %vm796_vm3, %v1259_v55 }
 0x22f   :  { %3875 = vmatmul.mubr.msk.f32.vlgmr.msra.gmra.mxu0 %vm796_vm3, %v1411_v57  ;;  %3877 = vmatprep.subr.mxu1 %v6129_v34 }
 0x230   :  { %3908 = vmatprep.subr.mxu0 %v6129_v34  ;;  %3905 = vmatprep.mubr.msk.f32.mxu1 %vm4178_vm2, %v6129_v34 }
 0x231   :  { %3936 = vmatprep.mubr.msk.f32.mxu0 %vm4178_vm2, %v6129_v34  ;;  %3878 = vmatpush3.msra.mxu1 %v3205_v61 }
 0x232   :  { %3909 = vmatpush3.msra.mxu0 %v3205_v61  ;;  %3879 = vmatprep.subr.mxu1 %v6129_v34  ;;  %v4939_v61 = vld [vmem:[%s6034_s4 + $0x68] sm:$0xff]  }
 0x233   :  { %3910 = vmatprep.subr.mxu0 %v6129_v34  ;;  %3880 = vmatpush3.msra.mxu1 %v3204_v63 }
 0x234   :  { %3911 = vmatpush3.msra.mxu0 %v3204_v63  ;;  %3881 = vmatprep.subr.mxu1 %v6129_v34  ;;  %v6131_v63 = vunpack.c.h.bf16 %v4939_v61 }
 0x235   :  { %3912 = vmatprep.subr.mxu0 %v6129_v34  ;;  %3882 = vmatpush3.msra.mxu1 %v3201_v3 }
 0x236   :  { %3913 = vmatpush3.msra.mxu0 %v3201_v3  ;;  %3883 = vmatprep.subr.mxu1 %v6129_v34  ;;  %v6089_v3 = vunpack.c.h.bf16 %v4945_v1 }
 0x237   :  { %3914 = vmatprep.subr.mxu0 %v6129_v34  ;;  %3884 = vmatpush3.msra.mxu1 %v3200_v5 }
 0x238   :  { %3915 = vmatpush3.msra.mxu0 %v3200_v5  ;;  %3885 = vmatprep.subr.mxu1 %v6129_v34  ;;  %v6127_v5 = vunpack.c.l.bf16 %v4939_v61 }
 0x239   :  { %3916 = vmatprep.subr.mxu0 %v6129_v34  ;;  %3886 = vmatpush3.msra.mxu1 %v3197_v11 }
 0x23a   :  { %3917 = vmatpush3.msra.mxu0 %v3197_v11  ;;  %3887 = vmatprep.subr.mxu1 %v6129_v34  ;;  %v4958_v11 = vld [vmem:[%s6034_s4 + $0x60] sm:$0xff]  }
 0x23b   :  { %3918 = vmatprep.subr.mxu0 %v6129_v34  ;;  %3888 = vmatpush3.msra.mxu1 %v3196_v13 }
 0x23c   :  { %3919 = vmatpush3.msra.mxu0 %v3196_v13  ;;  %3889 = vmatprep.subr.mxu1 %v6129_v34  ;;  %v6126_v13 = vunpack.c.h.bf16 %v4958_v11 }
 0x23d   :  { %3920 = vmatprep.subr.mxu0 %v6129_v34  ;;  %3890 = vmatpush3.msra.mxu1 %v3193_v18 }
 0x23e   :  { %3921 = vmatpush3.msra.mxu0 %v3193_v18  ;;  %3891 = vmatprep.subr.mxu1 %v6129_v34  ;;  %v6082_v18 = vunpack.c.h.bf16 %v4967_v16 }
 0x23f   :  { %3922 = vmatprep.subr.mxu0 %v6129_v34  ;;  %3892 = vmatpush3.msra.mxu1 %v3192_v20 }
 0x240   :  { %3923 = vmatpush3.msra.mxu0 %v3192_v20  ;;  %3893 = vmatprep.subr.mxu1 %v6129_v34  ;;  %v6125_v20 = vunpack.c.l.bf16 %v4958_v11 }
 0x241   :  { %3924 = vmatprep.subr.mxu0 %v6129_v34  ;;  %3894 = vmatpush3.msra.mxu1 %v3189_v22 }
 0x242   :  { %3925 = vmatpush3.msra.mxu0 %v3189_v22  ;;  %3895 = vmatprep.subr.mxu1 %v6129_v34  ;;  %v4984_v22 = vld [vmem:[%s6034_s4 + $0x58] sm:$0xff]  }
 0x243   :  { %3926 = vmatprep.subr.mxu0 %v6129_v34  ;;  %3896 = vmatpush3.msra.mxu1 %v3188_v23 }
 0x244   :  { %3927 = vmatpush3.msra.mxu0 %v3188_v23  ;;  %3897 = vmatprep.subr.mxu1 %v6129_v34  ;;  %v6124_v23 = vunpack.c.h.bf16 %v4984_v22 }
 0x245   :  { %3928 = vmatprep.subr.mxu0 %v6129_v34  ;;  %3898 = vmatpush3.msra.mxu1 %v3185_v25 }
 0x246   :  { %3929 = vmatpush3.msra.mxu0 %v3185_v25  ;;  %3899 = vmatprep.subr.mxu1 %v6129_v34  ;;  %v6070_v25 = vunpack.c.h.bf16 %v4993_v24 }
 0x247   :  { %3930 = vmatprep.subr.mxu0 %v6129_v34  ;;  %3900 = vmatpush3.msra.mxu1 %v3184_v26 }
 0x248   :  { %3931 = vmatpush3.msra.mxu0 %v3184_v26  ;;  %3901 = vmatprep.subr.mxu1 %v6129_v34  ;;  %v6122_v26 = vunpack.c.l.bf16 %v4984_v22 }
 0x249   :  { %3932 = vmatprep.subr.mxu0 %v6129_v34  ;;  %3902 = vmatpush3.msra.mxu1 %v3181_v28 }
 0x24a   :  { %3933 = vmatpush3.msra.mxu0 %v3181_v28  ;;  %3903 = vmatprep.subr.mxu1 %v6129_v34  ;;  %v5010_v28 = vld [vmem:[%s6034_s4 + $0x50] sm:$0xff]  }
 0x24b   :  { %3934 = vmatprep.subr.mxu0 %v6129_v34  ;;  %3904 = vmatpush3.msra.mxu1 %v3180_v31 }
 0x24c   :  { %3935 = vmatpush3.msra.mxu0 %v3180_v31  ;;  %3939 = vmatprep.subr.mxu1 %v6129_v34  ;;  %v6113_v31 = vunpack.c.h.bf16 %v5010_v28 }
 0x24d   :  { %3970 = vmatprep.subr.mxu0 %v6129_v34 }
 0x2b3   :  { %v1176_v38 = vpop.f32.mrf.mxu0 }
 0x2b4   :  { %v1103_v44 = vpop.f32.mrf.mxu1 }
 0x2b5   :  { %v3752_v36 = vpop.f32.mrf.mxu0  ;;  %v1177_v52 = vadd.f32 %v1176_v38, %v1103_v44  ;;  %v5019_v38 = vld [vmem:[%s6034_s4 + $0x18] sm:$0xff]  }
 0x2b6   :  { %v3721_v8 = vpop.f32.mrf.mxu1  ;;  %v6058_v44 = vunpack.c.h.bf16 %v5019_v38  ;;  %v6112_v36 = vunpack.c.l.bf16 %v5010_v28 }
 0x2b7   :  { %v6054_v8 = vunpack.c.l.bf16 %v5019_v38 }
 0x2d0   :  { %v1248_v30 = vpop.f32.mrf.mxu1 }
 0x2d1   :  { %v1331_v6 = vpop.f32.mrf.mxu0  ;;  %v1252_v60 = vadd.f32 %v1248_v30, %v1177_v52  ;;  %v5036_v30 = vld [vmem:[%s6034_s4 + $0x48] sm:$0xff]  }
 0x2d2   :  { %v3783_v48 = vpop.f32.mrf.mxu1  ;;  %v5071_v52 = vld [vmem:[%s6034_s4 + $0x8] sm:$0xff]  }
 0x2d3   :  { %v3814_v32 = vpop.f32.mrf.mxu0  ;;  %v5045_v48 = vld [vmem:[%s6034_s4 + $0x10] sm:$0xff]  }
 0x2d4   :  { %v6047_v32 = vunpack.c.h.bf16 %v5045_v48 }
 0x2ee   :  { %v1404_v46 = vpop.f32.mrf.mxu1 }
 0x2ef   :  { %v1405_v50 = vadd.f32 %v1404_v46, %v1331_v6  ;;  %v1480_v33 = vpop.f32.mrf.mxu0  ;;  %v6107_v6 = vunpack.c.h.bf16 %v5036_v30  ;;  %v6106_v46 = vunpack.c.l.bf16 %v5036_v30 }
 0x2f0   :  { %v3845_v54 = vpop.f32.mrf.mxu1 }
 0x2f1   :  { %v1484_v58 = vadd.f32 %v1480_v33, %v1405_v50  ;;  %v3876_v37 = vpop.f32.mrf.mxu0  ;;  %v6044_v50 = vunpack.c.l.bf16 %v5045_v48  ;;  %v5062_v33 = vld [vmem:[%s6034_s4 + $0x40] sm:$0xff]  }
 0x2f2   :  { %v6101_v54 = vunpack.c.h.bf16 %v5062_v33  ;;  %v6100_v37 = vunpack.c.l.bf16 %v5062_v33 }
 0x2f3   :  { %v1486_v56 = vrot.slane %v1484_v58, 1  ;;  %v6043_v58 = vunpack.c.h.bf16 %v5071_v52 }
 0x2f5   :  { %v1489_v0 = vsel %vm1488_vm12, %v1252_v60, %v1486_v56  ;;  %v4918_v15 = vadd.f32 %v1486_v56, %v36_v19  ;;  %v5085_v60 = vld [vmem:[%s6034_s4 + $0x38] sm:$0xff]   ;;  %v5090_v56 = vld [vmem:[%s6034_s4] sm:$0xff]  }
 0x2f6   :  { %v4920_v40 = vadd.f32 %v1489_v0, %v36_v19  ;;  %v6042_v19 = vunpack.c.l.bf16 %v5071_v52  ;;  %v6095_v0 = vunpack.c.h.bf16 %v5085_v60 }
 0x2f7   :  { %v1494_v2 = vsel %vm1493_vm13, %v4918_v15, 0.0  ;;  %v1503_v62 = vmul.f32 %v4918_v15, %v4918_v15 }
 0x2f8   :  { %v1492_v7 = vsel %vm796_vm3, %v4920_v40, 0.0  ;;  %v1502_v42 = vmul.f32 %v4920_v40, %v4920_v40 }
 0x2f9   :  { %v1495_v10 = vadd.f32 %v1494_v2, %v1492_v7  ;;  %v1505_v35 = vsel %vm1493_vm13, %v1503_v62, 0.0  ;;  %v6041_v2 = vunpack.c.h.bf16 %v5090_v56  ;;  %v6094_v62 = vunpack.c.l.bf16 %v5085_v60 }
 0x2fa   :  { %v1504_v29 = vsel %vm796_vm3, %v1502_v42, 0.0  ;;  %v6040_v7 = vunpack.c.l.bf16 %v5090_v56 }
 0x2fb   :  { %v1496_v4 = vrot.slane %v1495_v10, 4  ;;  %v1506_v14 = vadd.f32 %v1505_v35, %v1504_v29 }
 0x2fd   :  { %v1497_v17 = vadd.f32 %v1496_v4, %v1495_v10  ;;  %v1507_v43 = vrot.slane %v1506_v14, 4 }
 0x2ff   :  { %v1498_v45 = vrot.slane %v1497_v17, 2  ;;  %v1508_v12 = vadd.f32 %v1507_v43, %v1506_v14 }
 0x301   :  { %v1499_v47 = vadd.f32 %v1498_v45, %v1497_v17  ;;  %v1509_v49 = vrot.slane %v1508_v12, 2 }
 0x303   :  { %v1500_v51 = vrot.slane %v1499_v47, 1  ;;  %v1510_v53 = vadd.f32 %v1509_v49, %v1508_v12  ;;  %v37_v12 = vld [vmem:[%s6038_s8 + $0x4] ss:$0 sm:$0xff] }
 0x305   :  { %v1501_v55 = vadd.f32 %v1500_v51, %v1499_v47  ;;  %v1511_v57 = vrot.slane %v1510_v53, 1  ;;  %v38_v51 = vld [vmem:[%s6038_s8 + $0x5] ss:$0 sm:$0xff] }
 0x307   :  { %3906 = vmatmul.mubr.msk.f32.vlgmr.msra.gmra.mxu1 %vm796_vm3, %v1501_v55  ;;  %v1512_v59 = vadd.f32 %v1511_v57, %v1510_v53 }
 0x308   :  { %3967 = vmatprep.mubr.msk.f32.mxu1 %vm4178_vm2, %v6129_v34  ;;  %3940 = vmatpush3.msra.mxu1 %v6131_v63 }
 0x309   :  { %3937 = vmatmul.mubr.msk.f32.vlgmr.msra.gmra.mxu0 %vm796_vm3, %v1512_v59  ;;  %3941 = vmatprep.subr.mxu1 %v6129_v34 }
 0x30a   :  { %3998 = vmatprep.mubr.msk.f32.mxu0 %vm4178_vm2, %v6129_v34  ;;  %3971 = vmatpush3.msra.mxu0 %v6089_v3 }
 0x30b   :  { %3942 = vmatpush3.msra.mxu1 %v6127_v5  ;;  %3972 = vmatprep.subr.mxu0 %v6129_v34 }
 0x30c   :  { %3943 = vmatprep.subr.mxu1 %v6129_v34  ;;  %3973 = vmatpush3.msra.mxu0 %v6088_v9 }
 0x30d   :  { %3944 = vmatpush3.msra.mxu1 %v6126_v13  ;;  %3974 = vmatprep.subr.mxu0 %v6129_v34 }
 0x30e   :  { %3945 = vmatprep.subr.mxu1 %v6129_v34  ;;  %3975 = vmatpush3.msra.mxu0 %v6082_v18 }
 0x30f   :  { %3946 = vmatpush3.msra.mxu1 %v6125_v20  ;;  %3976 = vmatprep.subr.mxu0 %v6129_v34 }
 0x310   :  { %3947 = vmatprep.subr.mxu1 %v6129_v34  ;;  %3977 = vmatpush3.msra.mxu0 %v6076_v21 }
 0x311   :  { %3948 = vmatpush3.msra.mxu1 %v6124_v23  ;;  %3978 = vmatprep.subr.mxu0 %v6129_v34  ;;  %v5525_v23 = vld [vmem:[%s6038_s8 + $0x6] ss:$0 sm:$0xff] }
 0x312   :  { %3949 = vmatprep.subr.mxu1 %v6129_v34  ;;  %3979 = vmatpush3.msra.mxu0 %v6070_v25 }
 0x313   :  { %3950 = vmatpush3.msra.mxu1 %v6122_v26  ;;  %3980 = vmatprep.subr.mxu0 %v6129_v34 }
 0x314   :  { %3951 = vmatprep.subr.mxu1 %v6129_v34  ;;  %3981 = vmatpush3.msra.mxu0 %v6064_v27 }
 0x315   :  { %3952 = vmatpush3.msra.mxu1 %v6113_v31  ;;  %3982 = vmatprep.subr.mxu0 %v6129_v34 }
 0x316   :  { %3953 = vmatprep.subr.mxu1 %v6129_v34  ;;  %3983 = vmatpush3.msra.mxu0 %v6058_v44 }
 0x317   :  { %3954 = vmatpush3.msra.mxu1 %v6112_v36  ;;  %3984 = vmatprep.subr.mxu0 %v6129_v34 }
 0x318   :  { %3955 = vmatprep.subr.mxu1 %v6129_v34  ;;  %3985 = vmatpush3.msra.mxu0 %v6054_v8  ;;  %v5277_v8 = vld [vmem:[%s6035_s5 + $0xb0] sm:$0xff] }
 0x319   :  { %3956 = vmatpush3.msra.mxu1 %v6107_v6  ;;  %3986 = vmatprep.subr.mxu0 %v6129_v34  ;;  %v6069_v44 = vunpack.c.l.bf16 %v5277_v8 }
 0x31a   :  { %3957 = vmatprep.subr.mxu1 %v6129_v34  ;;  %3987 = vmatpush3.msra.mxu0 %v6047_v32 }
 0x31b   :  { %3958 = vmatpush3.msra.mxu1 %v6106_v46  ;;  %3988 = vmatprep.subr.mxu0 %v6129_v34 }
 0x31c   :  { %3959 = vmatprep.subr.mxu1 %v6129_v34  ;;  %3989 = vmatpush3.msra.mxu0 %v6044_v50  ;;  %v5225_v50 = vld [vmem:[%s6034_s4 + $0x70] sm:$0xff]  }
 0x31d   :  { %3960 = vmatpush3.msra.mxu1 %v6101_v54  ;;  %3990 = vmatprep.subr.mxu0 %v6129_v34  ;;  %v6052_v32 = vunpack.c.l.bf16 %v5225_v50 }
 0x31e   :  { %3961 = vmatprep.subr.mxu1 %v6129_v34  ;;  %3991 = vmatpush3.msra.mxu0 %v6043_v58 }
 0x31f   :  { %3962 = vmatpush3.msra.mxu1 %v6100_v37  ;;  %3992 = vmatprep.subr.mxu0 %v6129_v34 }
 0x320   :  { %3963 = vmatprep.subr.mxu1 %v6129_v34  ;;  %3993 = vmatpush3.msra.mxu0 %v6042_v19 }
 0x321   :  { %3964 = vmatpush3.msra.mxu1 %v6095_v0  ;;  %3994 = vmatprep.subr.mxu0 %v6129_v34 }
 0x322   :  { %3965 = vmatprep.subr.mxu1 %v6129_v34  ;;  %3995 = vmatpush3.msra.mxu0 %v6041_v2  ;;  %v5212_v2 = vld [vmem:[%s6034_s4 + $0x78] sm:$0xff]  }
 0x323   :  { %3966 = vmatpush3.msra.mxu1 %v6094_v62  ;;  %3996 = vmatprep.subr.mxu0 %v6129_v34  ;;  %v6050_v58 = vunpack.c.h.bf16 %v5212_v2 }
 0x324   :  { %3997 = vmatpush3.msra.mxu0 %v6040_v7  ;;  %4001 = vmatprep.subr.mxu1 %v6129_v34 }
 0x3c7   :  { %v1582_v42 = vpop.f32.mrf.mxu1 }
 0x3c8   :  { %v1586_v10 = vmul.f32 0.010204081, %v1582_v42 }
 0x3c9   :  { %v3907_v35 = vpop.f32.mrf.mxu1  ;;  %v1656_v29 = vpop.f32.mrf.mxu0 }
 0x3ca   :  { %v1661_v4 = vmul.f32 %v1586_v10, %v1586_v10  ;;  %v1660_v14 = vmul.f32 0.010204081, %v1656_v29 }
 0x3cb   :  { %v3938_v17 = vpop.f32.mrf.mxu0 }
 0x3cc   :  { %v1662_v43 = vsub.f32 %v1660_v14, %v1661_v4 }
 0x3ce   :  { %v1663_v45 = vadd.f32 1e-05, %v1662_v43 }
 0x3d0   :  { %4139 = vrsqrt.f32 %v1663_v45 }
 0x3dd   :  { %v4140_v47 = vpop.eup %4139 }
 0x3de   :  { %v1665_v49 = vmul.f32 %v4140_v47, %v37_v12 }
 0x3e0   :  { %v1666_v53 = vmul.f32 %v1665_v49, %v1586_v10  ;;  %v1671_v55 = vrot.slane %v1665_v49, %v4587_v41 }
 0x3e2   :  { %v1667_v57 = vsub.f32 %v38_v51, %v1666_v53  ;;  %v1672_v59 = vmul.f32 %v1671_v55, %v4920_v40  ;;  %v1673_v42 = vmul.f32 %v1671_v55, %v4918_v15  ;;  %v5132_v15 = vld [vmem:[%s6034_s4 + $0xa0] sm:$0xff]  }
 0x3e4   :  { %v1677_v35 = vrot.slane %v1667_v57, %v4587_v41 }
 0x3e6   :  { %v1678_v29 = vadd.f32 %v1677_v35, %v1672_v59  ;;  %v1679_v4 = vadd.f32 %v1677_v35, %v1673_v42  ;;  %v6083_v35 = vunpack.c.h.bf16 %v5132_v15 }
 0x3e8   :  { %v1682_v14 = vmul.f32 1.442695, %v1678_v29  ;;  %v1684_v17 = vmul.f32 1.442695, %v1679_v4  ;;  %vm1680_vm14 = vcmp.gt.f32.partialorder %v1678_v29, 0.0  ;;  %vm1681_vm15 = vcmp.gt.f32.partialorder %v1679_v4, 0.0 }
 0x3ea   :  { %4141 = vpow2.f32 %v1682_v14 }
 0x3eb   :  { %4143 = vpow2.f32 %v1684_v17 }
 0x3f7   :  { %v4142_v43 = vpop.eup %4141 }
 0x3f8   :  { %v4144_v45 = vpop.eup %4143  ;;  %v2900_v12 = vadd.f32 -1.0, %v4142_v43  ;;  %v5150_v43 = vld [vmem:[%s6034_s4 + $0x98] sm:$0xff]  }
 0x3f9   :  { %v2901_v47 = vadd.f32 -1.0, %v4144_v45 }
 0x3fa   :  { %v1688_v10 = vmul.f32 1.6732632, %v2900_v12 }
 0x3fb   :  { %v1689_v49 = vmul.f32 1.6732632, %v2901_v47  ;;  %v6077_v47 = vunpack.c.l.bf16 %v5132_v15 }
 0x3fc   :  { %v1690_v51 = vsel %vm1680_vm14, %v1678_v29, %v1688_v10 }
 0x3fd   :  { %v5127_v40 = vmul.f32 1.050701, %v1690_v51  ;;  %v1691_v53 = vsel %vm1681_vm15, %v1679_v4, %v1689_v49  ;;  %v6071_v49 = vunpack.c.h.bf16 %v5150_v43 }
 0x3fe   :  { %v5134_v55 = vmul.f32 1.050701, %v1691_v53  ;;  %v5172_v53 = vld [vmem:[%s6034_s4 + $0x90] sm:$0xff]  }
 0x3ff   :  { %v1695_v57 = vrot.slane %v5127_v40, 1  ;;  %v1697_v59 = vrot.slane %v5127_v40, 2  ;;  %v1701_v42 = vrot.slane %v5127_v40, 3  ;;  %v2162_v14 = vrot.slane %v5127_v40, 7 }
 0x400   :  { %v5141_v29 = vrot.slane %v5134_v55, 1 }
 0x401   :  { %v1703_v17 = vsel %vm1030_vm7, %v1695_v57, %v1697_v59  ;;  %v1699_v4 = vsel %vm1030_vm7, %v5127_v40, %v1695_v57  ;;  %v2167_v10 = vsel %vm1030_vm7, %v2162_v14, %v5134_v55  ;;  %v6065_v57 = vunpack.c.l.bf16 %v5150_v43 }
 0x402   :  { %v1704_v45 = vsel %vm1408_vm11, %v1703_v17, %v1701_v42  ;;  %v1700_v12 = vsel %vm1408_vm11, %v1699_v4, %v1697_v59  ;;  %v5166_v51 = vsel %vm1408_vm11, %v2167_v10, %v5141_v29  ;;  %v6059_v14 = vunpack.c.h.bf16 %v5172_v53  ;;  %v5186_v17 = vld [vmem:[%s6034_s4 + $0x88] sm:$0xff]  }
 0x403   :  { %3968 = vmatmul.mubr.msk.f32.vlgmr.msra.gmra.mxu1 %vm796_vm3, %v1704_v45  ;;  %3999 = vmatmul.mubr.msk.f32.vlgmr.msra.gmra.mxu0 %vm796_vm3, %v1700_v12  ;;  %v6057_v4 = vunpack.c.l.bf16 %v5172_v53  ;;  %v6048_v45 = vunpack.c.h.bf16 %v5186_v17  ;;  %v5199_v12 = vld [vmem:[%s6034_s4 + $0x80] sm:$0xff]   ;;  %v6045_v10 = vunpack.c.l.bf16 %v5186_v17 }
 0x404   :  { %4002 = vmatpush3.msra.mxu1 %v6083_v35  ;;  %4029 = vmatprep.mubr.msk.f32.mxu1 %vm4178_vm2, %v6129_v34  ;;  %v6046_v7 = vunpack.c.h.bf16 %v5199_v12  ;;  %v6049_v19 = vunpack.c.l.bf16 %v5199_v12 }
 0x405   :  { %4003 = vmatprep.subr.mxu1 %v6129_v34  ;;  %2006 = vmatprep.mubr.f32.mxu0 %v6129_v34 }
 0x406   :  { %4004 = vmatpush3.msra.mxu1 %v6077_v47 }
 0x407   :  { %4005 = vmatprep.subr.mxu1 %v6129_v34 }
 0x408   :  { %4006 = vmatpush3.msra.mxu1 %v6071_v49 }
 0x409   :  { %4007 = vmatprep.subr.mxu1 %v6129_v34 }
 0x40a   :  { %4008 = vmatpush3.msra.mxu1 %v6065_v57 }
 0x40b   :  { %4009 = vmatprep.subr.mxu1 %v6129_v34 }
 0x40c   :  { %4010 = vmatpush3.msra.mxu1 %v6059_v14 }
 0x40d   :  { %4011 = vmatprep.subr.mxu1 %v6129_v34 }
 0x40e   :  { %4012 = vmatpush3.msra.mxu1 %v6057_v4 }
 0x40f   :  { %4013 = vmatprep.subr.mxu1 %v6129_v34 }
 0x410   :  { %4014 = vmatpush3.msra.mxu1 %v6048_v45  ;;  %v1851_v45 = vrot.slane %v5127_v40, 4  ;;  %v5252_v40 = vld [vmem:[%s6035_s5 + $0x58] sm:$0xff] }
 0x411   :  { %4015 = vmatprep.subr.mxu1 %v6129_v34 }
 0x412   :  { %4016 = vmatpush3.msra.mxu1 %v6045_v10  ;;  %v6053_v10 = vunpack.c.l.bf16 %v5212_v2 }
 0x413   :  { %4017 = vmatprep.subr.mxu1 %v6129_v34 }
 0x414   :  { %4018 = vmatpush3.msra.mxu1 %v6046_v7  ;;  %v6051_v7 = vunpack.c.h.bf16 %v5225_v50 }
 0x415   :  { %4019 = vmatprep.subr.mxu1 %v6129_v34 }
 0x416   :  { %4020 = vmatpush3.msra.mxu1 %v6049_v19  ;;  %v1853_v19 = vsel %vm1030_vm7, %v1697_v59, %v1701_v42  ;;  %v6055_v59 = vunpack.c.h.bf16 %v5252_v40  ;;  %v6056_v42 = vunpack.c.l.bf16 %v5252_v40 }
 0x417   :  { %4021 = vmatprep.subr.mxu1 %v6129_v34 }
 0x418   :  { %4022 = vmatpush3.msra.mxu1 %v6050_v58  ;;  %v1854_v58 = vsel %vm1408_vm11, %v1853_v19, %v1851_v45 }
 0x419   :  { %4023 = vmatprep.subr.mxu1 %v6129_v34 }
 0x41a   :  { %4024 = vmatpush3.msra.mxu1 %v6053_v10 }
 0x41b   :  { %4025 = vmatprep.subr.mxu1 %v6129_v34 }
 0x41c   :  { %4026 = vmatpush3.msra.mxu1 %v6051_v7  ;;  %v5259_v7 = vld [vmem:[%s6035_s5 + $0xb8] sm:$0xff] }
 0x41d   :  { %4027 = vmatprep.subr.mxu1 %v6129_v34  ;;  %v6060_v19 = vunpack.c.h.bf16 %v5259_v7 }
 0x41e   :  { %4028 = vmatpush3.msra.mxu1 %v6052_v32  ;;  %v6063_v32 = vunpack.c.l.bf16 %v5259_v7 }
 0x41f   :  { %4030 = vmatmul.mubr.msk.f32.vlgmr.msra.gmra.mxu1 %vm796_vm3, %v1854_v58  ;;  %v5264_v58 = vld [vmem:[%s6035_s5 + $0x50] sm:$0xff]  ;;  %2023 = vmatprep.subr.mxu1 %v6055_v59  ;;  %v5282_v59 = vld [vmem:[%s6035_s5 + $0x48] sm:$0xff] }
 0x420   :  { %2079 = vmatprep.mubr.f32.mxu1 %v6129_v34  ;;  %v6061_v45 = vunpack.c.h.bf16 %v5264_v58  ;;  %2024 = vmatpush1.msra.mxu1 %v6056_v42  ;;  %v6062_v10 = vunpack.c.l.bf16 %v5264_v58  ;;  %v6066_v42 = vunpack.c.h.bf16 %v5277_v8  ;;  %v6067_v4 = vunpack.c.h.bf16 %v5282_v59 }
 0x421   :  { %1950 = vmatprep.subr.mxu0 %v6060_v19  ;;  %v6068_v14 = vunpack.c.l.bf16 %v5282_v59  ;;  %v5299_v19 = vld [vmem:[%s6035_s5 + $0xa8] sm:$0xff] }
 0x422   :  { %2025 = vmatprep.subr.mxu1 %v6061_v45  ;;  %1951 = vmatpush1.msra.mxu0 %v6063_v32  ;;  %v5304_v45 = vld [vmem:[%s6035_s5 + $0x40] sm:$0xff]  ;;  %v6075_v27 = vunpack.c.l.bf16 %v5299_v19 }
 0x423   :  { %2026 = vmatpush1.msra.mxu1 %v6062_v10  ;;  %1952 = vmatprep.subr.mxu0 %v6066_v42  ;;  %v6072_v10 = vunpack.c.h.bf16 %v5299_v19  ;;  %v6073_v32 = vunpack.c.h.bf16 %v5304_v45  ;;  %v6074_v57 = vunpack.c.l.bf16 %v5304_v45  ;;  %v5321_v42 = vld [vmem:[%s6035_s5 + $0xa0] sm:$0xff] }
 0x424   :  { %2027 = vmatprep.subr.mxu1 %v6067_v4  ;;  %1953 = vmatpush1.msra.mxu0 %v6069_v44  ;;  %v5326_v4 = vld [vmem:[%s6035_s5 + $0x38] sm:$0xff]  ;;  %v6081_v25 = vunpack.c.l.bf16 %v5321_v42 }
 0x425   :  { %2028 = vmatpush1.msra.mxu1 %v6068_v14  ;;  %1954 = vmatprep.subr.mxu0 %v6072_v10  ;;  %v6078_v14 = vunpack.c.h.bf16 %v5321_v42  ;;  %v6079_v44 = vunpack.c.h.bf16 %v5326_v4  ;;  %v6080_v49 = vunpack.c.l.bf16 %v5326_v4  ;;  %v5343_v10 = vld [vmem:[%s6035_s5 + $0x98] sm:$0xff] }
 0x426   :  { %2029 = vmatprep.subr.mxu1 %v6073_v32  ;;  %1955 = vmatpush1.msra.mxu0 %v6075_v27  ;;  %v5348_v32 = vld [vmem:[%s6035_s5 + $0x30] sm:$0xff]  ;;  %v6087_v21 = vunpack.c.l.bf16 %v5343_v10 }
 0x427   :  { %2030 = vmatpush1.msra.mxu1 %v6074_v57  ;;  %1956 = vmatprep.subr.mxu0 %v6078_v14  ;;  %v6084_v57 = vunpack.c.h.bf16 %v5343_v10  ;;  %v6085_v27 = vunpack.c.h.bf16 %v5348_v32  ;;  %v6086_v47 = vunpack.c.l.bf16 %v5348_v32  ;;  %v5365_v14 = vld [vmem:[%s6035_s5 + $0x90] sm:$0xff] }
 0x428   :  { %2031 = vmatprep.subr.mxu1 %v6079_v44  ;;  %1957 = vmatpush1.msra.mxu0 %v6081_v25  ;;  %v5370_v44 = vld [vmem:[%s6035_s5 + $0x28] sm:$0xff]  ;;  %v6093_v18 = vunpack.c.l.bf16 %v5365_v14 }
 0x429   :  { %2032 = vmatpush1.msra.mxu1 %v6080_v49  ;;  %1958 = vmatprep.subr.mxu0 %v6084_v57  ;;  %v6090_v49 = vunpack.c.h.bf16 %v5365_v14  ;;  %v6091_v25 = vunpack.c.h.bf16 %v5370_v44  ;;  %v6092_v35 = vunpack.c.l.bf16 %v5370_v44  ;;  %v5387_v57 = vld [vmem:[%s6035_s5 + $0x88] sm:$0xff] }
 0x42a   :  { %2033 = vmatprep.subr.mxu1 %v6085_v27  ;;  %1959 = vmatpush1.msra.mxu0 %v6087_v21  ;;  %v5392_v27 = vld [vmem:[%s6035_s5 + $0x20] sm:$0xff]  ;;  %v6099_v9 = vunpack.c.l.bf16 %v5387_v57 }
 0x42b   :  { %2034 = vmatpush1.msra.mxu1 %v6086_v47  ;;  %1960 = vmatprep.subr.mxu0 %v6090_v49  ;;  %v6096_v47 = vunpack.c.h.bf16 %v5387_v57  ;;  %v6097_v21 = vunpack.c.h.bf16 %v5392_v27  ;;  %v6098_v3 = vunpack.c.l.bf16 %v5392_v27  ;;  %v5409_v49 = vld [vmem:[%s6035_s5 + $0x80] sm:$0xff] }
 0x42c   :  { %2035 = vmatprep.subr.mxu1 %v6091_v25  ;;  %1961 = vmatpush1.msra.mxu0 %v6093_v18  ;;  %v5414_v25 = vld [vmem:[%s6035_s5 + $0x18] sm:$0xff]  ;;  %v6105_v62 = vunpack.c.l.bf16 %v5409_v49 }
 0x42d   :  { %2036 = vmatpush1.msra.mxu1 %v6092_v35  ;;  %1962 = vmatprep.subr.mxu0 %v6096_v47  ;;  %v6102_v35 = vunpack.c.h.bf16 %v5409_v49  ;;  %v6103_v18 = vunpack.c.h.bf16 %v5414_v25  ;;  %v6104_v0 = vunpack.c.l.bf16 %v5414_v25  ;;  %v5431_v47 = vld [vmem:[%s6035_s5 + $0x78] sm:$0xff] }
 0x42e   :  { %2037 = vmatprep.subr.mxu1 %v6097_v21  ;;  %1963 = vmatpush1.msra.mxu0 %v6099_v9  ;;  %v5436_v21 = vld [vmem:[%s6035_s5 + $0x10] sm:$0xff]  ;;  %v6111_v37 = vunpack.c.l.bf16 %v5431_v47 }
 0x42f   :  { %2038 = vmatpush1.msra.mxu1 %v6098_v3  ;;  %1964 = vmatprep.subr.mxu0 %v6102_v35  ;;  %v6108_v3 = vunpack.c.h.bf16 %v5431_v47  ;;  %v6109_v9 = vunpack.c.h.bf16 %v5436_v21  ;;  %v6110_v54 = vunpack.c.l.bf16 %v5436_v21  ;;  %v5453_v35 = vld [vmem:[%s6035_s5 + $0x70] sm:$0xff] }
 0x430   :  { %2039 = vmatprep.subr.mxu1 %v6103_v18  ;;  %1965 = vmatpush1.msra.mxu0 %v6105_v62  ;;  %v5458_v18 = vld [vmem:[%s6035_s5 + $0x8] sm:$0xff]  ;;  %v6121_v46 = vunpack.c.l.bf16 %v5453_v35 }
 0x431   :  { %2040 = vmatpush1.msra.mxu1 %v6104_v0  ;;  %6151 = vst [vmem:[#allocation7_spill] sm:$0xff] %v5458_v18  ;;  %1966 = vmatprep.subr.mxu0 %v6108_v3  ;;  %v6114_v0 = vunpack.c.h.bf16 %v5453_v35  ;;  %v6115_v62 = vunpack.c.h.bf16 %v5458_v18  ;;  %v6116_v6 = vunpack.c.l.bf16 %v5458_v18  ;;  %v5475_v3 = vld [vmem:[%s6035_s5 + $0x68] sm:$0xff] }
 0x432   :  { %2041 = vmatprep.subr.mxu1 %v6109_v9  ;;  %1967 = vmatpush1.msra.mxu0 %v6111_v37  ;;  %v5480_v9 = vld [vmem:[%s6035_s5] sm:$0xff]  ;;  %v6120_v36 = vunpack.c.l.bf16 %v5475_v3 }
 0x433   :  { %2042 = vmatpush1.msra.mxu1 %v6110_v54  ;;  %6152 = vst [vmem:[#allocation8_spill] sm:$0xff] %v5480_v9  ;;  %1968 = vmatprep.subr.mxu0 %v6114_v0  ;;  %v6117_v54 = vunpack.c.h.bf16 %v5475_v3  ;;  %v6118_v37 = vunpack.c.h.bf16 %v5480_v9  ;;  %v6119_v31 = vunpack.c.l.bf16 %v5480_v9  ;;  %v5497_v0 = vld [vmem:[%s6035_s5 + $0x60] sm:$0xff] }
 0x434   :  { %2043 = vmatprep.subr.mxu1 %v6115_v62  ;;  %1969 = vmatpush1.msra.mxu0 %v6121_v46  ;;  %v6123_v62 = vunpack.c.h.bf16 %v5497_v0 }
 0x435   :  { %2044 = vmatpush1.msra.mxu1 %v6116_v6  ;;  %1970 = vmatprep.subr.mxu0 %v6117_v54  ;;  %v6128_v6 = vunpack.c.l.bf16 %v5497_v0  ;;  %v5515_v54 = vld [vmem:[%s6035_s5 + $0x118] sm:$0xff] }
 0x436   :  { %2045 = vmatprep.subr.mxu1 %v6118_v37  ;;  %1971 = vmatpush1.msra.mxu0 %v6120_v36  ;;  %v6133_v37 = vunpack.c.h.bf16 %v5515_v54 }
 0x437   :  { %2046 = vmatpush1.msra.mxu1 %v6119_v31  ;;  %1972 = vmatprep.subr.mxu0 %v6123_v62 }
 0x438   :  { %4032 = vmatprep.subr.mxu1 %v6129_v34  ;;  %1973 = vmatpush1.msra.mxu0 %v6128_v6 }
 0x439   :  { %2097 = vmatprep.subr.mxu0 %v6133_v37 }
 0x4c3   :  { %v1774_v31 = vpop.f32.mrf.mxu1  ;;  %v1847_v36 = vpop.f32.mrf.mxu0 }
 0x4c4   :  { %v1848_v62 = vadd.f32 %v1847_v36, %v1774_v31  ;;  %v6154_v36 = vmov 0.0  }
 0x4c5   :  { %v3969_v46 = vpop.f32.mrf.mxu1  ;;  %v4000_v26 = vpop.f32.mrf.mxu0 }
 0x4c6   :  { %v5531_v26 = vld [vmem:[%s6035_s5 + $0x110] sm:$0xff]  ;;  %v6155_v46 = vunpack.c.l.bf16 %v4939_v61 }
 0x4df   :  { %v1924_v20 = vpop.f32.mrf.mxu1 }
 0x4e0   :  { %v1928_v13 = vadd.f32 %v1924_v20, %v1848_v62  ;;  %v6137_v20 = vunpack.c.l.bf16 %v5515_v54  ;;  %v5566_v62 = vld [vmem:[%s6035_s5 + $0xf8] sm:$0xff] }
 0x4e1   :  { %v4031_v5 = vpop.f32.mrf.mxu1 }
 0x4e2   :  { %v1929_v6 = vadd.f32 %v1928_v13, %v5525_v23  ;;  %v5539_v5 = vld [vmem:[%s6035_s5 + $0x108] sm:$0xff]  ;;  %v5551_v13 = vld [vmem:[%s6035_s5 + $0x100] sm:$0xff] }
 0x4e4   :  { %v1931_v34 = vmul.f32 1.442695, %v1929_v6  ;;  %vm1930_vm0 = vcmp.gt.f32.partialorder %v1929_v6, 0.0 }
 0x4e6   :  { %4145 = vpow2.f32 %v1931_v34 }
 0x4f3   :  { %v4146_v63 = vpop.eup %4145 }
 0x4f4   :  { %v2905_v41 = vadd.f32 -1.0, %v4146_v63  ;;  %v6153_v63 = vunpack.c.h.bf16 %v4939_v61  ;;  %v6156_v61 = vunpack.c.h.bf16 %v4958_v11 }
 0x4f6   :  { %v1934_v37 = vmul.f32 1.6732632, %v2905_v41  ;;  %v6135_v41 = vunpack.c.h.bf16 %v5531_v26 }
 0x4f8   :  { %v1935_v39 = vsel %vm1930_vm0, %v1929_v6, %v1934_v37  ;;  %v6138_v6 = vunpack.c.h.bf16 %v5539_v5  ;;  %v6139_v37 = vunpack.c.l.bf16 %v5539_v5 }
 0x4f9   :  { %v5533_v31 = vmul.f32 1.050701, %v1935_v39  ;;  %v6136_v39 = vunpack.c.l.bf16 %v5531_v26 }
 0x4fb   :  { %v1938_v34 = vrot.slane %v5533_v31, 1  ;;  %2907 = vmatmul.mubr.msk.f32.vlgmr.msra.gmra.mxu1 %vm1939_vm1, %v5533_v31 }
 0x4fc   :  { %4033 = vmatpush3.msra.mxu1 %v6153_v63  ;;  %4060 = vmatprep.mubr.msk.f32.mxu1 %vm4178_vm2, %v6154_v36  ;;  %v6141_v63 = vunpack.c.l.bf16 %v5551_v13 }
 0x4fd   :  { %4034 = vmatprep.subr.mxu1 %v6154_v36  ;;  %2906 = vmatmul.mubr.msk.f32.vlgmr.msra.gmra.mxu0 %vm1939_vm1, %v1938_v34  ;;  %v6140_v34 = vunpack.c.h.bf16 %v5551_v13 }
 0x4fe   :  { %2098 = vmatpush1.msra.mxu0 %v6137_v20  ;;  %4035 = vmatpush3.msra.mxu1 %v6155_v46  ;;  %v5580_v46 = vld [vmem:[%s6035_s5 + $0xf0] sm:$0xff]  ;;  %v5594_v20 = vld [vmem:[%s6035_s5 + $0xe8] sm:$0xff] }
 0x4ff   :  { %2099 = vmatprep.subr.mxu0 %v6135_v41  ;;  %4036 = vmatprep.subr.mxu1 %v6154_v36  ;;  %v6142_v41 = vunpack.c.h.bf16 %v5566_v62 }
 0x500   :  { %2100 = vmatpush1.msra.mxu0 %v6136_v39  ;;  %4037 = vmatpush3.msra.mxu1 %v6156_v61  ;;  %v6157_v39 = vunpack.c.l.bf16 %v4958_v11  ;;  %v6143_v61 = vunpack.c.l.bf16 %v5566_v62  ;;  %v6158_v11 = vunpack.c.h.bf16 %v4984_v22 }
 0x501   :  { %2101 = vmatprep.subr.mxu0 %v6138_v6  ;;  %4038 = vmatprep.subr.mxu1 %v6154_v36  ;;  %v6144_v6 = vunpack.c.h.bf16 %v5580_v46 }
 0x502   :  { %2102 = vmatpush1.msra.mxu0 %v6139_v37  ;;  %4039 = vmatpush3.msra.mxu1 %v6157_v39  ;;  %v5608_v37 = vld [vmem:[%s6035_s5 + $0xe0] sm:$0xff]  ;;  %v5622_v39 = vld [vmem:[%s6035_s5 + $0xd8] sm:$0xff] }
 0x503   :  { %2103 = vmatprep.subr.mxu0 %v6140_v34  ;;  %4040 = vmatprep.subr.mxu1 %v6154_v36  ;;  %v6160_v34 = vunpack.c.l.bf16 %v5580_v46  ;;  %v6165_v9 = vunpack.c.h.bf16 %v5608_v37 }
 0x504   :  { %2104 = vmatpush1.msra.mxu0 %v6141_v63  ;;  %4041 = vmatpush3.msra.mxu1 %v6158_v11  ;;  %v6159_v63 = vunpack.c.l.bf16 %v4984_v22  ;;  %v6161_v22 = vunpack.c.h.bf16 %v5010_v28  ;;  %v6162_v11 = vunpack.c.h.bf16 %v5594_v20 }
 0x505   :  { %2105 = vmatprep.subr.mxu0 %v6142_v41  ;;  %4042 = vmatprep.subr.mxu1 %v6154_v36  ;;  %v6163_v41 = vunpack.c.l.bf16 %v5594_v20 }
 0x506   :  { %2106 = vmatpush1.msra.mxu0 %v6143_v61  ;;  %4043 = vmatpush3.msra.mxu1 %v6159_v63  ;;  %v5636_v61 = vld [vmem:[%s6035_s5 + $0xd0] sm:$0xff]  ;;  %v5650_v63 = vld [vmem:[%s6035_s5 + $0xc8] sm:$0xff] }
 0x507   :  { %2107 = vmatprep.subr.mxu0 %v6144_v6  ;;  %4044 = vmatprep.subr.mxu1 %v6154_v36  ;;  %v6166_v6 = vunpack.c.l.bf16 %v5608_v37 }
 0x508   :  { %2108 = vmatpush1.msra.mxu0 %v6160_v34  ;;  %4045 = vmatpush3.msra.mxu1 %v6161_v22  ;;  %v6164_v34 = vunpack.c.l.bf16 %v5010_v28  ;;  %v6167_v28 = vunpack.c.h.bf16 %v5036_v30  ;;  %v6168_v22 = vunpack.c.h.bf16 %v5622_v39 }
 0x509   :  { %2109 = vmatprep.subr.mxu0 %v6162_v11  ;;  %4046 = vmatprep.subr.mxu1 %v6154_v36  ;;  %v6169_v11 = vunpack.c.l.bf16 %v5622_v39 }
 0x50a   :  { %2110 = vmatpush1.msra.mxu0 %v6163_v41  ;;  %4047 = vmatpush3.msra.mxu1 %v6164_v34  ;;  %v5664_v34 = vld [vmem:[%s6035_s5 + $0xc0] sm:$0xff]  ;;  %v6171_v41 = vunpack.c.h.bf16 %v5636_v61 }
 0x50b   :  { %2111 = vmatprep.subr.mxu0 %v6165_v9  ;;  %4048 = vmatprep.subr.mxu1 %v6154_v36  ;;  %v302_v18 = vunpack.c.h.bf16 %v5664_v34  ;;  %v6173_v9 = vunpack.c.h.bf16 %v5062_v33 }
 0x50c   :  { %2112 = vmatpush1.msra.mxu0 %v6166_v6  ;;  %4049 = vmatpush3.msra.mxu1 %v6167_v28  ;;  %v6170_v6 = vunpack.c.l.bf16 %v5036_v30  ;;  %v303_v28 = vunpack.c.l.bf16 %v5650_v63  ;;  %v6174_v30 = vunpack.c.h.bf16 %v5650_v63 }
 0x50d   :  { %2113 = vmatprep.subr.mxu0 %v6168_v22  ;;  %4050 = vmatprep.subr.mxu1 %v6154_v36  ;;  %v6172_v22 = vunpack.c.l.bf16 %v5636_v61 }
 0x50e   :  { %2114 = vmatpush1.msra.mxu0 %v6169_v11  ;;  %4051 = vmatpush3.msra.mxu1 %v6170_v6  ;;  %v301_v11 = vunpack.c.l.bf16 %v5664_v34  ;;  %v2086_v6 = vrot.slane %v5533_v31, 2  ;;  %v6177_v31 = vunpack.c.l.bf16 %v5085_v60 }
 0x50f   :  { %2115 = vmatprep.subr.mxu0 %v6171_v41  ;;  %4052 = vmatprep.subr.mxu1 %v6154_v36  ;;  %v6175_v41 = vunpack.c.l.bf16 %v5062_v33  ;;  %v6176_v33 = vunpack.c.h.bf16 %v5085_v60  ;;  %v6181_v60 = vunpack.c.h.bf16 %v4967_v16 }
 0x510   :  { %2116 = vmatpush1.msra.mxu0 %v6172_v22  ;;  %4053 = vmatpush3.msra.mxu1 %v6173_v9  ;;  %v2169_v9 = vrot.slane %v5134_v55, 2  ;;  %v2171_v22 = vsel %vm1030_vm7, %v5134_v55, %v5141_v29 }
 0x511   :  { %2117 = vmatprep.subr.mxu0 %v6174_v30  ;;  %4054 = vmatprep.subr.mxu1 %v6154_v36  ;;  %v6178_v30 = vunpack.c.h.bf16 %v4945_v1 }
 0x512   :  { %2118 = vmatpush1.msra.mxu0 %v303_v28  ;;  %4055 = vmatpush3.msra.mxu1 %v6175_v41  ;;  %v2172_v41 = vsel %vm1408_vm11, %v2171_v22, %v2169_v9  ;;  %v6182_v22 = vunpack.c.l.bf16 %v5132_v15 }
 0x513   :  { %2119 = vmatprep.subr.mxu0 %v302_v18  ;;  %4056 = vmatprep.subr.mxu1 %v6154_v36 }
 0x514   :  { %2120 = vmatpush1.msra.mxu0 %v301_v11  ;;  %2153 = vmatprep.mubr.f32.mxu0 %v6154_v36 }
 0x515   :  { %4057 = vmatpush3.msra.mxu1 %v6176_v33  ;;  %2908 = vmatmul.mubr.msk.f32.vlgmr.msra.gmra.mxu0 %vm1939_vm1, %v2086_v6  ;;  %v6179_v6 = vunpack.c.l.bf16 %v4945_v1  ;;  %v6180_v33 = vunpack.c.h.bf16 %v5132_v15  ;;  %v6183_v1 = vunpack.c.l.bf16 %v4967_v16  ;;  %v6186_v15 = vunpack.c.l.bf16 %v5150_v43 }
 0x516   :  { %4058 = vmatprep.subr.mxu1 %v6154_v36  ;;  %4063 = vmatprep.subr.mxu0 %v6154_v36  ;;  %v6187_v16 = vunpack.c.l.bf16 %v4993_v24 }
 0x517   :  { %4059 = vmatpush3.msra.mxu1 %v6177_v31  ;;  %4064 = vmatpush3.msra.mxu0 %v6178_v30  ;;  %v6184_v31 = vunpack.c.h.bf16 %v5150_v43  ;;  %v6185_v30 = vunpack.c.h.bf16 %v4993_v24  ;;  %v6190_v43 = vunpack.c.l.bf16 %v5172_v53  ;;  %v6191_v24 = vunpack.c.l.bf16 %v5019_v38 }
 0x518   :  { %4061 = vmatmul.mubr.msk.f32.vlgmr.msra.gmra.mxu1 %vm796_vm3, %v2172_v41  ;;  %4065 = vmatprep.subr.mxu0 %v6154_v36  ;;  %v6188_v41 = vunpack.c.h.bf16 %v5172_v53  ;;  %v6194_v53 = vunpack.c.l.bf16 %v5186_v17 }
 0x519   :  { %4094 = vmatprep.subr.mxu1 %v6154_v36  ;;  %4066 = vmatpush3.msra.mxu0 %v6179_v6  ;;  %v6189_v6 = vunpack.c.h.bf16 %v5019_v38  ;;  %v6195_v38 = vunpack.c.l.bf16 %v5045_v48 }
 0x51a   :  { %4095 = vmatpush3.msra.mxu1 %v6180_v33  ;;  %4067 = vmatprep.subr.mxu0 %v6154_v36  ;;  %v6192_v33 = vunpack.c.h.bf16 %v5186_v17  ;;  %v6198_v17 = vunpack.c.l.bf16 %v5199_v12 }
 0x51b   :  { %4096 = vmatprep.subr.mxu1 %v6154_v36  ;;  %4068 = vmatpush3.msra.mxu0 %v6181_v60  ;;  %v6193_v60 = vunpack.c.h.bf16 %v5045_v48  ;;  %v6199_v48 = vunpack.c.l.bf16 %v5071_v52 }
 0x51c   :  { %4097 = vmatpush3.msra.mxu1 %v6182_v22  ;;  %4069 = vmatprep.subr.mxu0 %v6154_v36  ;;  %v6196_v22 = vunpack.c.h.bf16 %v5199_v12  ;;  %v6202_v12 = vunpack.c.l.bf16 %v5212_v2 }
 0x51d   :  { %4098 = vmatprep.subr.mxu1 %v6154_v36  ;;  %4070 = vmatpush3.msra.mxu0 %v6183_v1  ;;  %v6197_v1 = vunpack.c.h.bf16 %v5071_v52  ;;  %v6203_v52 = vunpack.c.l.bf16 %v5090_v56 }
 0x51e   :  { %4099 = vmatpush3.msra.mxu1 %v6184_v31  ;;  %4071 = vmatprep.subr.mxu0 %v6154_v36  ;;  %v6200_v31 = vunpack.c.h.bf16 %v5212_v2  ;;  %v6204_v2 = vunpack.c.h.bf16 %v5225_v50 }
 0x51f   :  { %4100 = vmatprep.subr.mxu1 %v6154_v36  ;;  %4072 = vmatpush3.msra.mxu0 %v6185_v30  ;;  %v6201_v30 = vunpack.c.h.bf16 %v5090_v56 }
 0x520   :  { %4101 = vmatpush3.msra.mxu1 %v6186_v15  ;;  %4073 = vmatprep.subr.mxu0 %v6154_v36  ;;  %v2319_v15 = vrot.slane %v5134_v55, 3  ;;  %v6206_v55 = vunpack.c.h.bf16 %v5259_v7 }
 0x521   :  { %4102 = vmatprep.subr.mxu1 %v6154_v36  ;;  %4074 = vmatpush3.msra.mxu0 %v6187_v16  ;;  %v2321_v16 = vsel %vm1030_vm7, %v5141_v29, %v2169_v9  ;;  %v6207_v29 = vunpack.c.l.bf16 %v5259_v7  ;;  %v6209_v9 = vunpack.c.h.bf16 %v5277_v8  ;;  %v6214_v7 = vunpack.c.l.bf16 %v5531_v26 }
 0x522   :  { %4103 = vmatpush3.msra.mxu1 %v6188_v41  ;;  %4075 = vmatprep.subr.mxu0 %v6154_v36  ;;  %v6205_v41 = vunpack.c.l.bf16 %v5225_v50  ;;  %v2322_v56 = vsel %vm1408_vm11, %v2321_v16, %v2319_v15  ;;  %v6210_v50 = vunpack.c.l.bf16 %v5515_v54  ;;  %v6236_v15 = vunpack.c.h.bf16 %v5608_v37 }
 0x523   :  { %4104 = vmatprep.subr.mxu1 %v6154_v36  ;;  %4076 = vmatpush3.msra.mxu0 %v6189_v6  ;;  %v6211_v6 = vunpack.c.l.bf16 %v5277_v8  ;;  %v6218_v8 = vunpack.c.l.bf16 %v5539_v5  ;;  %v6240_v16 = vunpack.c.h.bf16 %v5622_v39 }
 0x524   :  { %4105 = vmatpush3.msra.mxu1 %v6190_v43  ;;  %4077 = vmatprep.subr.mxu0 %v6154_v36  ;;  %v6212_v43 = vunpack.c.h.bf16 %v5531_v26  ;;  %v6221_v26 = vunpack.c.h.bf16 %v5343_v10 }
 0x525   :  { %4106 = vmatprep.subr.mxu1 %v6154_v36  ;;  %4078 = vmatpush3.msra.mxu0 %v6191_v24  ;;  %v6213_v24 = vunpack.c.h.bf16 %v5299_v19 }
 0x526   :  { %4107 = vmatpush3.msra.mxu1 %v6192_v33  ;;  %4079 = vmatprep.subr.mxu0 %v6154_v36  ;;  %v6215_v33 = vunpack.c.l.bf16 %v5299_v19  ;;  %v6222_v19 = vunpack.c.l.bf16 %v5551_v13 }
 0x527   :  { %4108 = vmatprep.subr.mxu1 %v6154_v36  ;;  %4080 = vmatpush3.msra.mxu0 %v6193_v60  ;;  %v6216_v60 = vunpack.c.h.bf16 %v5539_v5  ;;  %v6225_v5 = vunpack.c.h.bf16 %v5365_v14 }
 0x528   :  { %4109 = vmatpush3.msra.mxu1 %v6194_v53  ;;  %4081 = vmatprep.subr.mxu0 %v6154_v36  ;;  %v6219_v53 = vunpack.c.l.bf16 %v5321_v42 }
 0x529   :  { %4110 = vmatprep.subr.mxu1 %v6154_v36  ;;  %4082 = vmatpush3.msra.mxu0 %v6195_v38  ;;  %v6220_v38 = vunpack.c.h.bf16 %v5551_v13  ;;  %v6229_v13 = vunpack.c.h.bf16 %v5387_v57 }
 0x52a   :  { %4111 = vmatpush3.msra.mxu1 %v6196_v22  ;;  %4083 = vmatprep.subr.mxu0 %v6154_v36  ;;  %v6223_v22 = vunpack.c.l.bf16 %v5343_v10  ;;  %v6230_v10 = vunpack.c.l.bf16 %v5580_v46 }
 0x52b   :  { %4112 = vmatprep.subr.mxu1 %v6154_v36  ;;  %4084 = vmatpush3.msra.mxu0 %v6197_v1  ;;  %v6224_v1 = vunpack.c.h.bf16 %v5566_v62 }
 0x52c   :  { %4113 = vmatpush3.msra.mxu1 %v6198_v17  ;;  %4085 = vmatprep.subr.mxu0 %v6154_v36  ;;  %v6227_v17 = vunpack.c.l.bf16 %v5365_v14  ;;  %v6234_v14 = vunpack.c.l.bf16 %v5594_v20 }
 0x52d   :  { %4114 = vmatprep.subr.mxu1 %v6154_v36  ;;  %4086 = vmatpush3.msra.mxu0 %v6199_v48  ;;  %v6228_v48 = vunpack.c.h.bf16 %v5580_v46  ;;  %v6237_v46 = vunpack.c.h.bf16 %v5431_v47 }
 0x52e   :  { %4115 = vmatpush3.msra.mxu1 %v6200_v31  ;;  %4087 = vmatprep.subr.mxu0 %v6154_v36  ;;  %v6231_v31 = vunpack.c.l.bf16 %v5387_v57  ;;  %v6238_v57 = vunpack.c.l.bf16 %v5608_v37  ;;  %v6245_v37 = vunpack.c.h.bf16 %v5475_v3 }
 0x52f   :  { %4116 = vmatprep.subr.mxu1 %v6154_v36  ;;  %4088 = vmatpush3.msra.mxu0 %v6201_v30  ;;  %v6232_v30 = vunpack.c.h.bf16 %v5594_v20  ;;  %v6241_v20 = vunpack.c.h.bf16 %v5453_v35 }
 0x530   :  { %4117 = vmatpush3.msra.mxu1 %v6202_v12  ;;  %4089 = vmatprep.subr.mxu0 %v6154_v36  ;;  %v6235_v12 = vunpack.c.l.bf16 %v5409_v49 }
 0x531   :  { %4118 = vmatprep.subr.mxu1 %v6154_v36  ;;  %4090 = vmatpush3.msra.mxu0 %v6203_v52  ;;  %v6239_v52 = vunpack.c.l.bf16 %v5431_v47  ;;  %v6246_v47 = vunpack.c.l.bf16 %v5636_v61 }
 0x532   :  { %4091 = vmatprep.mubr.msk.f32.mxu0 %vm4178_vm2, %v6154_v36  ;;  %4119 = vmatpush3.msra.mxu1 %v6204_v2  ;;  %v6243_v2 = vunpack.c.l.bf16 %v5453_v35  ;;  %v6250_v35 = vunpack.c.l.bf16 %v5497_v0 }
 0x533   :  { %4092 = vmatmul.mubr.msk.f32.vlgmr.msra.gmra.mxu0 %vm796_vm3, %v5166_v51  ;;  %4120 = vmatprep.subr.mxu1 %v6154_v36  ;;  %v6208_v51 = vunpack.c.h.bf16 %v5515_v54  ;;  %v6217_v54 = vunpack.c.h.bf16 %v5321_v42  ;;  %v6226_v42 = vunpack.c.l.bf16 %v5566_v62  ;;  %v6233_v62 = vunpack.c.h.bf16 %v5409_v49 }
 0x534   :  { %4121 = vmatpush3.msra.mxu1 %v6205_v41  ;;  %4122 = vmatprep.mubr.msk.f32.mxu1 %vm4178_vm2, %v6154_v36  ;;  %v6242_v49 = vunpack.c.l.bf16 %v5622_v39  ;;  %v6244_v41 = vunpack.c.h.bf16 %v5636_v61  ;;  %v6249_v39 = vunpack.c.h.bf16 %v5497_v0 }
 0x535   :  { %4123 = vmatmul.mubr.msk.f32.vlgmr.msra.gmra.mxu1 %vm796_vm3, %v2322_v56  ;;  %2417 = vmatprep.subr.mxu0 %v6206_v55  ;;  %v6247_v56 = vunpack.c.l.bf16 %v5475_v3  ;;  %v6248_v55 = vunpack.c.h.bf16 %v5650_v63  ;;  %v6251_v3 = vunpack.c.h.bf16 %v5252_v40 }
 0x536   :  { %2418 = vmatpush1.msra.mxu0 %v6207_v29  ;;  %2564 = vmatprep.subr.mxu1 %v6208_v51 }
 0x537   :  { %2419 = vmatprep.subr.mxu0 %v6209_v9  ;;  %2565 = vmatpush1.msra.mxu1 %v6210_v50 }
 0x538   :  { %2420 = vmatpush1.msra.mxu0 %v6211_v6  ;;  %2566 = vmatprep.subr.mxu1 %v6212_v43 }
 0x539   :  { %2421 = vmatprep.subr.mxu0 %v6213_v24  ;;  %2567 = vmatpush1.msra.mxu1 %v6214_v7 }
 0x53a   :  { %2422 = vmatpush1.msra.mxu0 %v6215_v33  ;;  %2568 = vmatprep.subr.mxu1 %v6216_v60 }
 0x53b   :  { %2423 = vmatprep.subr.mxu0 %v6217_v54  ;;  %2569 = vmatpush1.msra.mxu1 %v6218_v8 }
 0x53c   :  { %2424 = vmatpush1.msra.mxu0 %v6219_v53  ;;  %2570 = vmatprep.subr.mxu1 %v6220_v38 }
 0x53d   :  { %2425 = vmatprep.subr.mxu0 %v6221_v26  ;;  %2571 = vmatpush1.msra.mxu1 %v6222_v19 }
 0x53e   :  { %2426 = vmatpush1.msra.mxu0 %v6223_v22  ;;  %2572 = vmatprep.subr.mxu1 %v6224_v1 }
 0x53f   :  { %2427 = vmatprep.subr.mxu0 %v6225_v5  ;;  %2573 = vmatpush1.msra.mxu1 %v6226_v42 }
 0x540   :  { %2428 = vmatpush1.msra.mxu0 %v6227_v17  ;;  %2574 = vmatprep.subr.mxu1 %v6228_v48  ;;  %v6252_v17 = vunpack.c.l.bf16 %v5252_v40  ;;  %v6254_v48 = vunpack.c.l.bf16 %v5264_v58  ;;  %v6258_v40 = vunpack.c.l.bf16 %v5304_v45 }
 0x541   :  { %2429 = vmatprep.subr.mxu0 %v6229_v13  ;;  %2575 = vmatpush1.msra.mxu1 %v6230_v10  ;;  %v6255_v13 = vunpack.c.h.bf16 %v5282_v59  ;;  %v6256_v10 = vunpack.c.l.bf16 %v5282_v59  ;;  %v6263_v59 = vunpack.c.h.bf16 %v5370_v44 }
 0x542   :  { %2430 = vmatpush1.msra.mxu0 %v6231_v31  ;;  %2576 = vmatprep.subr.mxu1 %v6232_v30  ;;  %v6257_v31 = vunpack.c.h.bf16 %v5304_v45  ;;  %v6260_v30 = vunpack.c.l.bf16 %v5326_v4  ;;  %v6265_v45 = vunpack.c.h.bf16 %v5392_v27 }
 0x543   :  { %2431 = vmatprep.subr.mxu0 %v6233_v62  ;;  %2577 = vmatpush1.msra.mxu1 %v6234_v14  ;;  %v6262_v62 = vunpack.c.l.bf16 %v5348_v32  ;;  %v6264_v14 = vunpack.c.l.bf16 %v5370_v44  ;;  %v6271_v44 = vld [vmem:[#allocation7_spill] sm:$0xff] }
 0x544   :  { %2432 = vmatpush1.msra.mxu0 %v6235_v12  ;;  %2578 = vmatprep.subr.mxu1 %v6236_v15  ;;  %v6266_v12 = vunpack.c.l.bf16 %v5392_v27  ;;  %v6268_v15 = vunpack.c.l.bf16 %v5414_v25  ;;  %v6274_v27 = vld [vmem:[#allocation8_spill] sm:$0xff] }
 0x545   :  { %2433 = vmatprep.subr.mxu0 %v6237_v46  ;;  %2579 = vmatpush1.msra.mxu1 %v6238_v57  ;;  %v6270_v46 = vunpack.c.l.bf16 %v5436_v21  ;;  %v6272_v57 = vunpack.c.h.bf16 %v6271_v44 }
 0x546   :  { %2434 = vmatpush1.msra.mxu0 %v6239_v52  ;;  %2580 = vmatprep.subr.mxu1 %v6240_v16  ;;  %v6273_v52 = vunpack.c.l.bf16 %v6271_v44  ;;  %v6275_v16 = vunpack.c.h.bf16 %v6274_v27 }
 0x547   :  { %2435 = vmatprep.subr.mxu0 %v6241_v20  ;;  %2581 = vmatpush1.msra.mxu1 %v6242_v49  ;;  %v6276_v20 = vunpack.c.l.bf16 %v6274_v27  ;;  %v3264_v49 = vld [vmem:[%s6036_s6 + $0x38] sm:$0xff]  }
 0x548   :  { %2436 = vmatpush1.msra.mxu0 %v6243_v2  ;;  %2582 = vmatprep.subr.mxu1 %v6244_v41  ;;  %v3117_v2 = vunpack.c.h.bf16 %v3264_v49 }
 0x549   :  { %2437 = vmatprep.subr.mxu0 %v6245_v37  ;;  %2583 = vmatpush1.msra.mxu1 %v6246_v47  ;;  %v3116_v37 = vunpack.c.l.bf16 %v3264_v49  ;;  %v3271_v47 = vld [vmem:[%s6036_s6 + $0x70] sm:$0xff]  }
 0x54a   :  { %2438 = vmatpush1.msra.mxu0 %v6247_v56  ;;  %2584 = vmatprep.subr.mxu1 %v6248_v55  ;;  %v3145_v56 = vunpack.c.h.bf16 %v3271_v47  ;;  %v3263_v55 = vld [vmem:[%s6036_s6 + $0x30] sm:$0xff]  }
 0x54b   :  { %2439 = vmatprep.subr.mxu0 %v6249_v39  ;;  %2585 = vmatpush1.msra.mxu1 %v303_v28  ;;  %v3113_v39 = vunpack.c.h.bf16 %v3263_v55 }
 0x54c   :  { %2440 = vmatpush1.msra.mxu0 %v6250_v35  ;;  %2586 = vmatprep.subr.mxu1 %v302_v18  ;;  %v3144_v35 = vunpack.c.l.bf16 %v3271_v47 }
 0x54d   :  { %2473 = vmatprep.mubr.f32.mxu0 %v6154_v36  ;;  %2490 = vmatprep.subr.mxu0 %v6251_v3  ;;  %v3112_v3 = vunpack.c.l.bf16 %v3263_v55 }
 0x54e   :  { %2587 = vmatpush1.msra.mxu1 %v301_v11  ;;  %2620 = vmatprep.mubr.f32.mxu1 %v6154_v36 }
 0x5bb   :  { %v2081_v61 = vpop.f32.mrf.mxu1 }
 0x5bd   :  { %v2008_v29 = vpop.f32.mrf.mxu0  ;;  %v2083_v28 = vpop.f32.mrf.mxu1 }
 0x5be   :  { %v2082_v63 = vadd.f32 %v2081_v61, %v2008_v29  ;;  %v3270_v61 = vld [vmem:[%s6036_s6 + $0x68] sm:$0xff]  }
 0x5bf   :  { %v2010_v51 = vpop.f32.mrf.mxu0  ;;  %v3141_v29 = vunpack.c.h.bf16 %v3270_v61 }
 0x5c0   :  { %v2084_v0 = vadd.f32 %v2083_v28, %v2010_v51  ;;  %v3140_v51 = vunpack.c.l.bf16 %v3270_v61 }
 0x5d5   :  { %v2155_v9 = vpop.f32.mrf.mxu0 }
 0x5d6   :  { %v5909_v50 = vadd.f32 %v2155_v9, %v2082_v63  ;;  %v3262_v63 = vld [vmem:[%s6036_s6 + $0x28] sm:$0xff]   ;;  %v3269_v9 = vld [vmem:[%s6036_s6 + $0x60] sm:$0xff]  }
 0x5d7   :  { %v2157_v18 = vpop.f32.mrf.mxu0  ;;  %v3109_v28 = vunpack.c.h.bf16 %v3262_v63 }
 0x5d8   :  { %v5911_v6 = vadd.f32 %v2157_v18, %v2084_v0  ;;  %v2242_v43 = vpop.f32.mrf.mxu1  ;;  %v3108_v0 = vunpack.c.l.bf16 %v3262_v63  ;;  %v3261_v18 = vld [vmem:[%s6036_s6 + $0x20] sm:$0xff]  }
 0x5da   :  { %v4062_v24 = vpop.f32.mrf.mxu1 }
 0x5db   :  { %v3105_v24 = vunpack.c.h.bf16 %v3261_v18 }
 0x5f3   :  { %v2315_v7 = vpop.f32.mrf.mxu0 }
 0x5f4   :  { %v2316_v33 = vadd.f32 %v2315_v7, %v2242_v43  ;;  %v3137_v43 = vunpack.c.h.bf16 %v3269_v9  ;;  %v3268_v7 = vld [vmem:[%s6036_s6 + $0x58] sm:$0xff]  }
 0x5f5   :  { %v4093_v34 = vpop.f32.mrf.mxu0  ;;  %v2392_v11 = vpop.f32.mrf.mxu1 }
 0x5f6   :  { %v2396_v60 = vadd.f32 %v2392_v11, %v2316_v33  ;;  %v3136_v33 = vunpack.c.l.bf16 %v3269_v9  ;;  %v3260_v34 = vld [vmem:[%s6036_s6 + $0x18] sm:$0xff]   ;;  %v3104_v11 = vunpack.c.l.bf16 %v3261_v18  ;;  %v42_v18 = vld [vmem:[%s6038_s8 + $0x10] ss:$0 sm:$0xff] }
 0x5f7   :  { %v4124_v54 = vpop.f32.mrf.mxu1 }
 0x5f8   :  { %v2397_v8 = vadd.f32 %v2396_v60, %v5525_v23  ;;  %v6253_v23 = vunpack.c.h.bf16 %v5264_v58  ;;  %v6261_v58 = vunpack.c.h.bf16 %v5348_v32  ;;  %v6269_v32 = vunpack.c.h.bf16 %v5436_v21 }
 0x5f9   :  { %v3133_v60 = vunpack.c.h.bf16 %v3268_v7  ;;  %v3101_v54 = vunpack.c.h.bf16 %v3260_v34 }
 0x5fa   :  { %v2399_v53 = vmul.f32 1.442695, %v2397_v8  ;;  %vm2398_vm2 = vcmp.gt.f32.partialorder %v2397_v8, 0.0 }
 0x5fc   :  { %4147 = vpow2.f32 %v2399_v53  ;;  %v3132_v53 = vunpack.c.l.bf16 %v3268_v7 }
 0x609   :  { %v4148_v38 = vpop.eup %4147 }
 0x60a   :  { %v2912_v26 = vadd.f32 -1.0, %v4148_v38  ;;  %v3259_v38 = vld [vmem:[%s6036_s6 + $0x10] sm:$0xff]  }
 0x60c   :  { %v2402_v19 = vmul.f32 1.6732632, %v2912_v26  ;;  %v3100_v26 = vunpack.c.l.bf16 %v3260_v34 }
 0x60e   :  { %v2403_v22 = vsel %vm2398_vm2, %v2397_v8, %v2402_v19  ;;  %v3267_v8 = vld [vmem:[%s6036_s6 + $0x50] sm:$0xff]  }
 0x60f   :  { %v2404_v1 = vmul.f32 1.050701, %v2403_v22  ;;  %v3129_v19 = vunpack.c.h.bf16 %v3267_v8  ;;  %v3097_v22 = vunpack.c.h.bf16 %v3259_v38 }
 0x611   :  { %v2406_v5 = vrot.slane %v2404_v1, 1  ;;  %v2553_v42 = vrot.slane %v2404_v1, 2 }
 0x613   :  { %2913 = vmatmul.mubr.msk.f32.vlgmr.msra.gmra.mxu0 %vm1939_vm1, %v2406_v5  ;;  %2915 = vmatmul.mubr.msk.f32.vlgmr.msra.gmra.mxu1 %vm1939_vm1, %v2553_v42  ;;  %v3128_v5 = vunpack.c.l.bf16 %v3267_v8  ;;  %v3258_v42 = vld [vmem:[%s6036_s6 + $0x8] sm:$0xff]  }
 0x614   :  { %2491 = vmatpush1.msra.mxu0 %v6252_v17  ;;  %2546 = vmatprep.mubr.f32.mxu0 %v6154_v36  ;;  %v6259_v36 = vunpack.c.h.bf16 %v5326_v4  ;;  %v6267_v4 = vunpack.c.h.bf16 %v5414_v25  ;;  %v3272_v25 = vld [vmem:[%s6036_s6 + $0x78] sm:$0xff]   ;;  %v3096_v17 = vunpack.c.l.bf16 %v3259_v38 }
 0x615   :  { %2492 = vmatprep.subr.mxu0 %v6253_v23  ;;  %v3149_v21 = vunpack.c.h.bf16 %v3272_v25  ;;  %v3148_v41 = vunpack.c.l.bf16 %v3272_v25 }
 0x616   :  { %2493 = vmatpush1.msra.mxu0 %v6254_v48  ;;  %v3093_v48 = vunpack.c.h.bf16 %v3258_v42 }
 0x617   :  { %2494 = vmatprep.subr.mxu0 %v6255_v13  ;;  %v3265_v13 = vld [vmem:[%s6036_s6 + $0x40] sm:$0xff]  }
 0x618   :  { %2495 = vmatpush1.msra.mxu0 %v6256_v10 }
 0x619   :  { %2496 = vmatprep.subr.mxu0 %v6257_v31  ;;  %v3087_v31 = vld [vmem:[%s6036_s6] sm:$0xff]  }
 0x61a   :  { %2497 = vmatpush1.msra.mxu0 %v6258_v40  ;;  %v3092_v40 = vunpack.c.l.bf16 %v3258_v42 }
 0x61b   :  { %2498 = vmatprep.subr.mxu0 %v6259_v36  ;;  %v3121_v36 = vunpack.c.h.bf16 %v3265_v13 }
 0x61c   :  { %2499 = vmatpush1.msra.mxu0 %v6260_v30  ;;  %v3089_v30 = vunpack.c.h.bf16 %v3087_v31 }
 0x61d   :  { %2500 = vmatprep.subr.mxu0 %v6261_v58  ;;  %v3120_v58 = vunpack.c.l.bf16 %v3265_v13 }
 0x61e   :  { %2501 = vmatpush1.msra.mxu0 %v6262_v62  ;;  %v3088_v62 = vunpack.c.l.bf16 %v3087_v31 }
 0x61f   :  { %2502 = vmatprep.subr.mxu0 %v6263_v59 }
 0x620   :  { %2503 = vmatpush1.msra.mxu0 %v6264_v14 }
 0x621   :  { %2504 = vmatprep.subr.mxu0 %v6265_v45 }
 0x622   :  { %2505 = vmatpush1.msra.mxu0 %v6266_v12 }
 0x623   :  { %2506 = vmatprep.subr.mxu0 %v6267_v4  ;;  %v2760_v4 = vld [vmem:[%s6038_s8 + $0x7] ss:$8 sm:$0x3]  ;;  %s4155_s8 = scalar_lea.vmem %s2753_s14, 32 }
 0x624   :  { %2507 = vmatpush1.msra.mxu0 %v6268_v15  ;;  %p4156_p0 = scmp.ne.s32.totalorder %s2753_s14, %s4155_s8  ;;  %p4161_p2 = scmp.lt.s32.totalorder %s4155_s8, %s4155_s8 }
 0x625   :  { %2508 = vmatprep.subr.mxu0 %v6269_v32 }
 0x626   :  { %2509 = vmatpush1.msra.mxu0 %v6270_v46  ;;  %v6277_v46 = vld [vmem:[#allocation5_spill] sm:$0xff]  ;;  %p4162_p3 = por %p4161_p2, %p4160_p1 }
 0x627   :  { %2510 = vmatprep.subr.mxu0 %v6272_v57  ;;  %v2644_v44 = vsub.s32 1, %v6277_v46 }
 0x628   :  { %2511 = vmatpush1.msra.mxu0 %v6273_v52  ;;  %p4163_p4 = pnand %p4162_p3, %p4156_p0 }
 0x629   :  { %2512 = vmatprep.subr.mxu0 %v6275_v16  ;;  %v6278_v16 = vld [vmem:[#allocation6_spill] sm:$0xff]  ;;  %v2645_v49 = vrot.slane %v2760_v4, %v2644_v44 }
 0x62a   :  { %2513 = vmatpush1.msra.mxu0 %v6276_v20  ;;  %v2641_v20 = vrot.slane %v2760_v4, %v6278_v16 }
 0x62b   :  { %2914 = vmatmul.mubr.msk.f32.vlgmr.msra.gmra.mxu0 %vm1939_vm1, %v2404_v1  ;;  %3552 = vmatprep.subr.mxu0 %v3149_v21  ;;  %v3266_v1 = vld [vmem:[%s6036_s6 + $0x48] sm:$0xff]  }
 0x62c   :  { %3553 = vmatpush3.msra.mxu0 %v3117_v2  ;;  %v3125_v23 = vunpack.c.h.bf16 %v3266_v1  ;;  %v3124_v10 = vunpack.c.l.bf16 %v3266_v1 }
 0x62d   :  { %3554 = vmatprep.subr.mxu0 %v3148_v41 }
 0x62e   :  { %3555 = vmatpush3.msra.mxu0 %v3116_v37 }
 0x62f   :  { %3556 = vmatprep.subr.mxu0 %v3145_v56 }
 0x630   :  { %3557 = vmatpush3.msra.mxu0 %v3113_v39 }
 0x631   :  { %3558 = vmatprep.subr.mxu0 %v3144_v35 }
 0x632   :  { %3559 = vmatpush3.msra.mxu0 %v3112_v3 }
 0x633   :  { %3560 = vmatprep.subr.mxu0 %v3141_v29 }
 0x634   :  { %3561 = vmatpush3.msra.mxu0 %v3109_v28 }
 0x635   :  { %3562 = vmatprep.subr.mxu0 %v3140_v51 }
 0x636   :  { %3563 = vmatpush3.msra.mxu0 %v3108_v0 }
 0x637   :  { %3564 = vmatprep.subr.mxu0 %v3137_v43 }
 0x638   :  { %3565 = vmatpush3.msra.mxu0 %v3105_v24 }
 0x639   :  { %3566 = vmatprep.subr.mxu0 %v3136_v33 }
 0x63a   :  { %3567 = vmatpush3.msra.mxu0 %v3104_v11 }
 0x63b   :  { %3568 = vmatprep.subr.mxu0 %v3133_v60  ;;  %v2734_v60 = vld [vmem:[%s6031_s1] sm:$0x3] }
 0x63c   :  { %3569 = vmatpush3.msra.mxu0 %v3101_v54 }
 0x63d   :  { %3570 = vmatprep.subr.mxu0 %v3132_v53 }
 0x63e   :  { %3571 = vmatpush3.msra.mxu0 %v3100_v26 }
 0x63f   :  { %3572 = vmatprep.subr.mxu0 %v3129_v19 }
 0x640   :  { %3573 = vmatpush3.msra.mxu0 %v3097_v22 }
 0x641   :  { %3574 = vmatprep.subr.mxu0 %v3128_v5 }
 0x642   :  { %3575 = vmatpush3.msra.mxu0 %v3096_v17 }
 0x643   :  { %3576 = vmatprep.subr.mxu0 %v3125_v23 }
 0x644   :  { %3577 = vmatpush3.msra.mxu0 %v3093_v48 }
 0x645   :  { %3578 = vmatprep.subr.mxu0 %v3124_v10 }
 0x646   :  { %3579 = vmatpush3.msra.mxu0 %v3092_v40 }
 0x647   :  { %3580 = vmatprep.subr.mxu0 %v3121_v36 }
 0x648   :  { %3581 = vmatpush3.msra.mxu0 %v3089_v30 }
 0x649   :  { %3582 = vmatprep.subr.mxu0 %v3120_v58 }
 0x64a   :  { %3583 = vmatpush3.msra.mxu0 %v3088_v62 }
 0x6d3   :  { %v2475_v59 = vpop.f32.mrf.mxu0  ;;  %v2622_v45 = vpop.f32.mrf.mxu1 }
 0x6d5   :  { %v2477_v14 = vpop.f32.mrf.mxu0  ;;  %v2624_v27 = vpop.f32.mrf.mxu1 }
 0x6eb   :  { %v2548_v12 = vpop.f32.mrf.mxu0 }
 0x6ec   :  { %v2549_v15 = vadd.f32 %v2548_v12, %v2475_v59 }
 0x6ed   :  { %v2550_v32 = vpop.f32.mrf.mxu0 }
 0x6ee   :  { %v2627_v57 = vadd.f32 %v2622_v45, %v2549_v15  ;;  %v2551_v52 = vadd.f32 %v2550_v32, %v2477_v14 }
 0x6f0   :  { %v2631_v25 = vrot.slane %v2627_v57, 7  ;;  %v2628_v21 = vadd.f32 %v2624_v27, %v2551_v52 }
 0x6f2   :  { %v2635_v2 = vsel %vm1030_vm7, %v5909_v50, %v2631_v25  ;;  %v2632_v41 = vrot.slane %v2628_v21, 7 }
 0x6f3   :  { %v2648_v37 = vadd.f32 %v2641_v20, %v2635_v2 }
 0x6f4   :  { %v2636_v47 = vsel %vm1030_vm7, %v5911_v6, %v2632_v41 }
 0x6f5   :  { %v2652_v56 = vmul.f32 1.442695, %v2648_v37  ;;  %v2649_v55 = vadd.f32 %v2645_v49, %v2636_v47  ;;  %vm2650_vm3 = vcmp.gt.f32.partialorder %v2648_v37, 0.0 }
 0x6f7   :  { %4149 = vpow2.f32 %v2652_v56  ;;  %v2654_v39 = vmul.f32 1.442695, %v2649_v55  ;;  %vm2651_vm4 = vcmp.gt.f32.partialorder %v2649_v55, 0.0 }
 0x6f9   :  { %4151 = vpow2.f32 %v2654_v39 }
 0x704   :  { %v4150_v35 = vpop.eup %4149 }
 0x705   :  { %v2916_v3 = vadd.f32 -1.0, %v4150_v35 }
 0x706   :  { %v4152_v61 = vpop.eup %4151 }
 0x707   :  { %v2917_v29 = vadd.f32 -1.0, %v4152_v61  ;;  %v2658_v63 = vmul.f32 1.6732632, %v2916_v3 }
 0x709   :  { %v2659_v28 = vmul.f32 1.6732632, %v2917_v29  ;;  %v2660_v51 = vsel %vm2650_vm3, %v2648_v37, %v2658_v63 }
 0x70a   :  { %v2662_v9 = vmul.f32 1.050701, %v2660_v51 }
 0x70b   :  { %v2661_v50 = vsel %vm2651_vm4, %v2649_v55, %v2659_v28 }
 0x70c   :  { %v2663_v0 = vmul.f32 1.050701, %v2661_v50 }
 0x70e   :  { %2728 = vmatprep.mubr.f32.mxu0 %v2663_v0 }
 0x70f   :  { %2729 = vmatmul.mubr.f32.vlgmr.msra.gmra.mxu0 %v2662_v9 }
 0x7cf   :  { %v3584_v6 = vpop.f32.mrf.mxu0 }
 0x7d1   :  { %v3585_v43 = vpop.f32.mrf.mxu0 }
 0x7d2   :  { %v3586_v24 = vadd.f32 %v3585_v43, %v3584_v6 }
 0x7d4   :  { %v2731_v7 = vadd.f32 %v3586_v24, %v42_v18 }
 0x7d6   :  { %v2735_v33 = vmul.f32 0.5, %v2731_v7 }
 0x7d8   :  { %v2736_v34 = vmul.f32 1.442695, %v2735_v33 }
 0x7da   :  { %4153 = vpow2.f32 %v2736_v34 }
 0x7e7   :  { %v4154_v11 = vpop.eup %4153 }
 0x7e8   :  { %2739 = vrot.lane.b32.xlu0 %v4154_v11, %s4179_s7 }
 0x85a   :  { %v2740_v54 = vpop.permute.xlu0 %2739 }
 0x85b   :  { %v2742_v8 = vmul.f32 %v2740_v54, %v2734_v60 }
 0x85d   :  { %v2743_v53 = vadd.f32 %v2742_v8, %v2731_v7 }
 0x85f   :  { %2745 = vst.msk [vmem:[#allocation2] sm:$0x3] %vm2744_vm5, %v2743_v53 }
 0x860   :  { %4166 = shalt.err (!%p4163_p4)
}
 0x861   :  { %2755 = dma.vmem_to_hbm [thread:$0]  %s2753_s14, 32, %s6039_s9, [#allocation3]  }
 0x862   :  { %4175 = dma.done.wait [#allocation3], 32  }
 0x863   :  { %4176 = vsyncadd [#allocation3], 4294967264 }
 0x864   :  { %2759 = vsyncpa [#allocation3], 1 }

</bundles_post_ra>
